<compile_context>
chip_gen: v7x
topology: tpu7x:2x2x1
jax: 0.10.0
libtpu: 0.0.40
codegen_flags: <defaults>
</compile_context>

<pallas_src>
import functools

import numpy as np
import jax
import jax.numpy as jnp
from jax import lax
from jax.experimental import pallas as pl
from jax.experimental.pallas import tpu as pltpu


# ----------------------------- Pallas kernel --------------------------------
def _convnet_pv_kernel(x_ref, gv1_ref, s1_ref, b1_ref,
                       v2_ref, s2_ref, b2_ref,
                       v3_ref, s3_ref, b3_ref,
                       wfc_ref, bfc_ref, wh_ref, bh_ref,
                       out_ref, *, k1, k2, k3, n1, n2p, c3p):
    """One batch element of ConvNetPV, fully VMEM resident, 20 bf16 MXU dots."""
    dot = functools.partial(jnp.dot, preferred_element_type=jnp.float32)
    bf16 = jnp.bfloat16

    def conv_block(a, s_ref, v_ref, b_ref, k, n_out):
        # Re-associated conv: one wide dot against the hcat'ed block weights,
        # then k tiny 0/1 row-gather dots on 128-lane-aligned slices of y.
        y = dot(a, v_ref[...]).astype(bf16)                  # (M_in, k * n_out)
        acc = dot(s_ref[0], y[:, :n_out])
        for i in range(1, k):
            acc = acc + dot(s_ref[i], y[:, i * n_out:(i + 1) * n_out])
        # Padded lanes stay exactly zero (v*/b* pad columns are zero) -- keep it so.
        return jnp.maximum(acc + b_ref[...], 0.0).astype(bf16)

    x = x_ref[0]                                             # (H, W) bf16
    a1 = conv_block(x, s1_ref, gv1_ref, b1_ref, k1, n1)      # (8, 256)
    a2 = conv_block(a1, s2_ref, v2_ref, b2_ref, k2, n2p)     # (8, 256)
    feat = conv_block(a2, s3_ref, v3_ref, b3_ref, k3, c3p)   # (8, 128); row 0 valid
    fc = jnp.maximum(dot(feat, wfc_ref[...]) + bfc_ref[...], 0.0).astype(bf16)
    out_ref[0] = (dot(fc, wh_ref[...]) + bh_ref[...]).astype(out_ref.dtype)


def convnet_pv_forward(plan, x, *, action_n=6):
    """Hot path: squeeze+cast x, one batch-gridded pallas_call, slice logit/value."""
    B, c_in, H, W = x.shape
    assert c_in == 1  # TODO(synk): generalize the fused gather construction to C_in > 1

    gv1, s1 = plan["gv1"], plan["s1"]
    v2h, s2 = plan["v2h"], plan["s2"]
    v3h, s3 = plan["v3h"], plan["s3"]
    wfc, wh = plan["wfc"], plan["wh"]
    k1, m1 = s1.shape[0], s1.shape[1]
    k2, m2 = s2.shape[0], s2.shape[1]
    k3, m3 = s3.shape[0], s3.shape[1]
    n1 = gv1.shape[1] // k1
    n2p = v2h.shape[1] // k2
    c3p = v3h.shape[1] // k3
    fcn, nh = wfc.shape[1], wh.shape[1]

    # No host-side pad: the MXU pads the K=W contraction internally.
    xb = x.reshape(B, H, W).astype(jnp.bfloat16)

    full2 = lambda a: pl.BlockSpec(a.shape, lambda b: (0, 0))
    full3 = lambda a: pl.BlockSpec(a.shape, lambda b: (0, 0, 0))

    dot_flops = lambda m, k, n: 2 * m * k * n
    flops = B * (dot_flops(H, W, k1 * n1) + k1 * dot_flops(m1, H, n1)
                 + dot_flops(m1, n1, k2 * n2p) + k2 * dot_flops(m2, m1, n2p)
                 + dot_flops(m2, n2p, k3 * c3p) + k3 * dot_flops(m3, m2, c3p)
                 + dot_flops(m3, c3p, fcn) + dot_flops(m3, fcn, nh))
    weight_bytes = sum(int(np.prod(v.shape)) * v.dtype.itemsize for v in plan.values())
    bytes_accessed = weight_bytes + xb.size * xb.dtype.itemsize + B * m3 * nh * 4

    out = pl.pallas_call(
        functools.partial(_convnet_pv_kernel, k1=k1, k2=k2, k3=k3,
                          n1=n1, n2p=n2p, c3p=c3p),
        out_shape=jax.ShapeDtypeStruct((B, m3, nh), jnp.float32),
        grid_spec=pltpu.PrefetchScalarGridSpec(
            num_scalar_prefetch=0,
            grid=(B,),
            in_specs=[
                pl.BlockSpec((1, H, W), lambda b: (b, 0, 0)),     # x: per-sample tile
                full2(gv1), full3(s1), full2(plan["b1"]),
                full2(v2h), full3(s2), full2(plan["b2"]),
                full2(v3h), full3(s3), full2(plan["b3"]),
                full2(wfc), full2(plan["bfc"]),
                full2(wh), full2(plan["bh"]),
            ],
            out_specs=pl.BlockSpec((1, m3, nh), lambda b: (b, 0, 0)),
        ),
        compiler_params=pltpu.CompilerParams(
            dimension_semantics=("parallel",)),
        cost_estimate=pl.CostEstimate(flops=int(flops), transcendentals=0,
                                      bytes_accessed=int(bytes_accessed)),
    )(xb, gv1, s1, plan["b1"], v2h, s2, plan["b2"],
      v3h, s3, plan["b3"], wfc, plan["bfc"], wh, plan["bh"])

    head = out[:, 0, :]                      # row 0 of each per-sample tile is valid
    return head[:, :action_n], head[:, action_n:action_n + 1]


# ------------------------- one-time weight folding ---------------------------
def _round_up(n, m):
    return -(-n // m) * m


def build_plan(params, *, in_shape, action_n):
    """Fold weights + gather structure once (outside the hot path).

    Batch-independent: gathers are built for a single sample (batch is a grid
    axis in the pallas_call), sublane-padded to multiples of 8, and all MXU
    operands are stored in bf16.
    """
    c_in, H, W = in_shape
    assert c_in == 1
    K1, ST1, C1 = 8, 4, 32
    K2, ST2, C2 = 4, 2, 64
    K3, ST3, C3 = 3, 1, 64
    OH1, OW1 = (H - K1) // ST1 + 1, (W - K1) // ST1 + 1
    OH2, OW2 = (OH1 - K2) // ST2 + 1, (OW1 - K2) // ST2 + 1
    OH3, OW3 = (OH2 - K3) // ST3 + 1, (OW2 - K3) // ST3 + 1
    assert OH3 == 1 and OW3 == 1, "fused flatten assumes a 1x1 conv3 output"

    N1 = OW1 * C1                      # 256  (conv1 blocked lane width)
    N2 = OW2 * C2                      # 192
    N2P = _round_up(N2, 128)           # 256  (conv2 blocked, lane padded)
    C3P = _round_up(C3, 128)           # 128  (feat, lane padded)
    M1 = _round_up(OH1, 8)             # 8    (sublane-padded row counts)
    M2 = _round_up(OH2, 8)             # 8
    M3 = _round_up(OH3, 8)             # 8
    FC = params["w_fc"].shape[0]       # 512
    NH = _round_up(action_n + 1, 128)  # 128  (fused policy+value head, lane padded)

    w1 = np.asarray(params["w1"], np.float32)
    w2 = np.asarray(params["w2"], np.float32)
    w3 = np.asarray(params["w3"], np.float32)

    # --- conv1: width-im2col gather folded straight into the weights ------------
    gw = np.zeros((W, OW1 * K1), np.float32)      # col (ow, j) <- input col ST1*ow + j
    for ow in range(OW1):
        for j in range(K1):
            gw[ST1 * ow + j, ow * K1 + j] = 1.0
    v1h = np.concatenate(
        [np.kron(np.eye(OW1, dtype=np.float32), w1[:, 0, i, :].T) for i in range(K1)],
        axis=1)                                    # (OW1*K1, K1*N1)
    gv1 = gw @ v1h                                 # (W, K1*N1): entries are raw w1 values

    # --- conv2 / conv3 block weights, hcat'ed over kernel-row i -----------------
    v2h = np.zeros((N1, K2 * N2P), np.float32)
    for i in range(K2):
        for ow2 in range(OW2):
            for j in range(K2):
                r0 = (ST2 * ow2 + j) * C1
                c0 = i * N2P + ow2 * C2
                v2h[r0:r0 + C1, c0:c0 + C2] = w2[:, :, i, j].T

    v3h = np.zeros((N2P, K3 * C3P), np.float32)
    for i in range(K3):
        for j in range(K3):
            v3h[j * C2:(j + 1) * C2, i * C3P:i * C3P + C3] = w3[:, :, i, j].T

    # --- 0/1 row-gather matrices (single sample, sublane-padded to 8) ------------
    def row_gather(k, out_rows, stride, out_pad, src_pad):
        s = np.zeros((k, out_pad, src_pad), np.float32)
        for i in range(k):
            for r in range(out_rows):
                s[i, r, stride * r + i] = 1.0
        return s

    s1 = row_gather(K1, OH1, ST1, M1, H)    # (8, 8, 36): picks input row ST1*oh + i
    s2 = row_gather(K2, OH2, ST2, M2, M1)   # (4, 8, 8)
    s3 = row_gather(K3, OH3, ST3, M3, M2)   # (3, 8, 8)

    # --- biases in blocked / lane-padded layouts ---------------------------------
    b1p = np.tile(np.asarray(params["b1"], np.float32), OW1).reshape(1, N1)
    b2p = np.zeros((1, N2P), np.float32)
    b2p[0, :N2] = np.tile(np.asarray(params["b2"], np.float32), OW2)
    b3p = np.zeros((1, C3P), np.float32)
    b3p[0, :C3] = np.asarray(params["b3"], np.float32)

    # FC (the PyTorch NCHW flatten is trivial at 1x1 spatial) + fused P/V head.
    wfc = np.zeros((C3P, FC), np.float32)
    wfc[:C3, :] = np.asarray(params["w_fc"], np.float32).T
    bfc = np.asarray(params["b_fc"], np.float32).reshape(1, FC)
    wh = np.zeros((FC, NH), np.float32)
    wh[:, :action_n] = np.asarray(params["w_pi"], np.float32).T
    wh[:, action_n:action_n + 1] = np.asarray(params["w_v"], np.float32).T
    bh = np.zeros((1, NH), np.float32)
    bh[0, :action_n] = np.asarray(params["b_pi"], np.float32)
    bh[0, action_n] = float(np.asarray(params["b_v"], np.float32)[0])

    bf16 = jnp.bfloat16
    return {
        "gv1": jnp.asarray(gv1, bf16), "s1": jnp.asarray(s1, bf16), "b1": jnp.asarray(b1p),
        "v2h": jnp.asarray(v2h, bf16), "s2": jnp.asarray(s2, bf16), "b2": jnp.asarray(b2p),
        "v3h": jnp.asarray(v3h, bf16), "s3": jnp.asarray(s3, bf16), "b3": jnp.asarray(b3p),
        "wfc": jnp.asarray(wfc, bf16), "bfc": jnp.asarray(bfc),
        "wh": jnp.asarray(wh, bf16), "bh": jnp.asarray(bh),
    }


# ----------------------------- params / reference ---------------------------
def kaiming_uniform(key, shape, fan_in):
    bound = (6.0 / fan_in) ** 0.5                     # nn.init.kaiming_uniform
    return jax.random.uniform(key, shape, jnp.float32, -bound, bound)


def init_params(key, c_in, flatten_size, action_n):
    ks = jax.random.split(key, 12)
    # NB: the PyTorch module zero-inits biases; small nonzero biases are used here
    # so the self-check also exercises the fused bias path (forward math identical).
    def bias(k, n):
        return 0.05 * jax.random.normal(k, (n,), jnp.float32)
    return {
        "w1": kaiming_uniform(ks[0], (32, c_in, 8, 8), c_in * 8 * 8),
        "b1": bias(ks[1], 32),
        "w2": kaiming_uniform(ks[2], (64, 32, 4, 4), 32 * 4 * 4),
        "b2": bias(ks[3], 64),
        "w3": kaiming_uniform(ks[4], (64, 64, 3, 3), 64 * 3 * 3),
        "b3": bias(ks[5], 64),
        "w_fc": kaiming_uniform(ks[6], (512, flatten_size), flatten_size),
        "b_fc": bias(ks[7], 512),
        "w_pi": kaiming_uniform(ks[8], (action_n, 512), 512),
        "b_pi": bias(ks[9], action_n),
        "w_v": kaiming_uniform(ks[10], (1, 512), 512),
        "b_v": bias(ks[11], 1),
    }


def reference_forward(params, x_nchw):
    """Pure-JAX/XLA f32 reference mirroring the PyTorch module."""
    dn = ("NCHW", "OIHW", "NCHW")
    hp = lax.Precision.HIGHEST

    def conv(x, w, b, s):
        y = lax.conv_general_dilated(x, w, (s, s), "VALID",
                                     dimension_numbers=dn, precision=hp)
        return jnp.maximum(y + b[None, :, None, None], 0.0)

    x = conv(x_nchw, params["w1"], params["b1"], 4)
    x = conv(x, params["w2"], params["b2"], 2)
    x = conv(x, params["w3"], params["b3"], 1)
    feat = x.reshape(x.shape[0], -1)
    fc = jnp.maximum(feat @ params["w_fc"].T + params["b_fc"], 0.0)
    logit = fc @ params["w_pi"].T + params["b_pi"]
    value = fc @ params["w_v"].T + params["b_v"]
    return logit, value


# ----------------------------------- main ------------------------------------
if __name__ == "__main__":
    # CHW = (1, 36, 36), action_n = 6.
    # Conv stack: 36 -(k8,s4)-> 8 -(k4,s2)-> 3 -(k3,s1)-> 1  =>  flatten = 64*1*1 = 64
    B, C_IN, H, W, ACTION_N = 2, 1, 36, 36, 6
    FLATTEN = 64 * 1 * 1

    key = jax.random.PRNGKey(0)
    k_params, k_x = jax.random.split(key)
    params = init_params(k_params, C_IN, FLATTEN, ACTION_N)
    x = jax.random.normal(k_x, (B, C_IN, H, W), jnp.float32)

    # one-time weight folding (outside the hot path, batch independent)
    plan = build_plan(params, in_shape=(C_IN, H, W), action_n=ACTION_N)
    fwd = jax.jit(functools.partial(convnet_pv_forward, action_n=ACTION_N))

    logit, value = fwd(plan, x)
    jax.block_until_ready((logit, value))
    assert logit.shape == (B, ACTION_N) and value.shape == (B, 1)

    ref_logit, ref_value = reference_forward(params, x)
    # bf16 MXU operands (per perf review) => relaxed tolerance vs. the f32 reference;
    # observed error is ~1e-2 absolute on O(0.5) logits, structural bugs would be >>0.1.
    assert jnp.allclose(logit, ref_logit, rtol=4e-2, atol=4e-2), \
        float(jnp.max(jnp.abs(logit - ref_logit)))
    assert jnp.allclose(value, ref_value, rtol=4e-2, atol=4e-2), \
        float(jnp.max(jnp.abs(value - ref_value)))

    print("KERNEL_OK")
</pallas_src>

<mosaic_0001>
module attributes {stable_mosaic.version = 11 : i64} {
  func.func @_convnet_pv_kernel(%arg0: i32, %arg1: memref<1x36x36xbf16, #tpu.memory_space<vmem>>, %arg2: memref<36x2048xbf16, #tpu.memory_space<vmem>>, %arg3: memref<8x8x36xbf16, #tpu.memory_space<vmem>>, %arg4: memref<1x256xf32, #tpu.memory_space<vmem>>, %arg5: memref<256x1024xbf16, #tpu.memory_space<vmem>>, %arg6: memref<4x8x8xbf16, #tpu.memory_space<vmem>>, %arg7: memref<1x256xf32, #tpu.memory_space<vmem>>, %arg8: memref<256x384xbf16, #tpu.memory_space<vmem>>, %arg9: memref<3x8x8xbf16, #tpu.memory_space<vmem>>, %arg10: memref<1x128xf32, #tpu.memory_space<vmem>>, %arg11: memref<128x512xbf16, #tpu.memory_space<vmem>>, %arg12: memref<1x512xf32, #tpu.memory_space<vmem>>, %arg13: memref<512x128xbf16, #tpu.memory_space<vmem>>, %arg14: memref<1x128xf32, #tpu.memory_space<vmem>>, %arg15: memref<1x8x128xf32, #tpu.memory_space<vmem>>) attributes {dimension_semantics = [#tpu.dimension_semantics<parallel>], iteration_bounds = array<i64: 2>, scalar_prefetch = 0 : i64, scratch_operands = 0 : i64, tpu.core_type = #tpu.core_type<tc>, window_params = [{transform_indices = @transform_0, window_bounds = array<i64: 1, 36, 36>}, {pipeline_mode = #tpu.pipeline_mode<synchronous>, transform_indices = @transform_1, window_bounds = array<i64: 36, 2048>}, {pipeline_mode = #tpu.pipeline_mode<synchronous>, transform_indices = @transform_2, window_bounds = array<i64: 8, 8, 36>}, {pipeline_mode = #tpu.pipeline_mode<synchronous>, transform_indices = @transform_3, window_bounds = array<i64: 1, 256>}, {pipeline_mode = #tpu.pipeline_mode<synchronous>, transform_indices = @transform_4, window_bounds = array<i64: 256, 1024>}, {pipeline_mode = #tpu.pipeline_mode<synchronous>, transform_indices = @transform_5, window_bounds = array<i64: 4, 8, 8>}, {pipeline_mode = #tpu.pipeline_mode<synchronous>, transform_indices = @transform_6, window_bounds = array<i64: 1, 256>}, {pipeline_mode = #tpu.pipeline_mode<synchronous>, transform_indices = @transform_7, window_bounds = array<i64: 256, 384>}, {pipeline_mode = #tpu.pipeline_mode<synchronous>, transform_indices = @transform_8, window_bounds = array<i64: 3, 8, 8>}, {pipeline_mode = #tpu.pipeline_mode<synchronous>, transform_indices = @transform_9, window_bounds = array<i64: 1, 128>}, {pipeline_mode = #tpu.pipeline_mode<synchronous>, transform_indices = @transform_10, window_bounds = array<i64: 128, 512>}, {pipeline_mode = #tpu.pipeline_mode<synchronous>, transform_indices = @transform_11, window_bounds = array<i64: 1, 512>}, {pipeline_mode = #tpu.pipeline_mode<synchronous>, transform_indices = @transform_12, window_bounds = array<i64: 512, 128>}, {pipeline_mode = #tpu.pipeline_mode<synchronous>, transform_indices = @transform_13, window_bounds = array<i64: 1, 128>}, {transform_indices = @transform_14, window_bounds = array<i64: 1, 8, 128>}]} {
    %c0 = arith.constant 0 : index
    %c0_0 = arith.constant 0 : index
    %c0_1 = arith.constant 0 : index
    %0 = vector.load %arg1[%c0, %c0_0, %c0_1] : memref<1x36x36xbf16, #tpu.memory_space<vmem>>, vector<1x36x36xbf16>
    %1 = vector.shape_cast %0 : vector<1x36x36xbf16> to vector<36x36xbf16>
    %c0_2 = arith.constant 0 : index
    %c0_3 = arith.constant 0 : index
    %2 = vector.load %arg2[%c0_2, %c0_3] : memref<36x2048xbf16, #tpu.memory_space<vmem>>, vector<36x2048xbf16>
    %cst = arith.constant dense<0.000000e+00> : vector<36x2048xf32>
    %3 = tpu.matmul %1, %2, %cst {dimension_numbers = #tpu.dot_dimension_numbers<[1], [0], [0], [1], [0, 0, 1, 1], [], []>} : vector<36x36xbf16>, vector<36x2048xbf16>, vector<36x2048xf32> -> vector<36x2048xf32>
    %4 = arith.truncf %3 : vector<36x2048xf32> to vector<36x2048xbf16>
    %c0_4 = arith.constant 0 : index
    %c0_5 = arith.constant 0 : index
    %c0_6 = arith.constant 0 : index
    %5 = vector.load %arg3[%c0_4, %c0_5, %c0_6] : memref<8x8x36xbf16, #tpu.memory_space<vmem>>, vector<1x8x36xbf16>
    %6 = vector.shape_cast %5 : vector<1x8x36xbf16> to vector<8x36xbf16>
    %7 = vector.extract_strided_slice %4 {offsets = [0, 0], sizes = [36, 256], strides = [1, 1]} : vector<36x2048xbf16> to vector<36x256xbf16>
    %cst_7 = arith.constant dense<0.000000e+00> : vector<8x256xf32>
    %8 = tpu.matmul %6, %7, %cst_7 {dimension_numbers = #tpu.dot_dimension_numbers<[1], [0], [0], [1], [0, 0, 1, 1], [], []>} : vector<8x36xbf16>, vector<36x256xbf16>, vector<8x256xf32> -> vector<8x256xf32>
    %c1 = arith.constant 1 : index
    %c0_8 = arith.constant 0 : index
    %c0_9 = arith.constant 0 : index
    %9 = vector.load %arg3[%c1, %c0_8, %c0_9] : memref<8x8x36xbf16, #tpu.memory_space<vmem>>, vector<1x8x36xbf16>
    %10 = vector.shape_cast %9 : vector<1x8x36xbf16> to vector<8x36xbf16>
    %11 = vector.extract_strided_slice %4 {offsets = [0, 256], sizes = [36, 256], strides = [1, 1]} : vector<36x2048xbf16> to vector<36x256xbf16>
    %cst_10 = arith.constant dense<0.000000e+00> : vector<8x256xf32>
    %12 = tpu.matmul %10, %11, %cst_10 {dimension_numbers = #tpu.dot_dimension_numbers<[1], [0], [0], [1], [0, 0, 1, 1], [], []>} : vector<8x36xbf16>, vector<36x256xbf16>, vector<8x256xf32> -> vector<8x256xf32>
    %13 = arith.addf %8, %12 : vector<8x256xf32>
    %c2 = arith.constant 2 : index
    %c0_11 = arith.constant 0 : index
    %c0_12 = arith.constant 0 : index
    %14 = vector.load %arg3[%c2, %c0_11, %c0_12] : memref<8x8x36xbf16, #tpu.memory_space<vmem>>, vector<1x8x36xbf16>
    %15 = vector.shape_cast %14 : vector<1x8x36xbf16> to vector<8x36xbf16>
    %16 = vector.extract_strided_slice %4 {offsets = [0, 512], sizes = [36, 256], strides = [1, 1]} : vector<36x2048xbf16> to vector<36x256xbf16>
    %cst_13 = arith.constant dense<0.000000e+00> : vector<8x256xf32>
    %17 = tpu.matmul %15, %16, %cst_13 {dimension_numbers = #tpu.dot_dimension_numbers<[1], [0], [0], [1], [0, 0, 1, 1], [], []>} : vector<8x36xbf16>, vector<36x256xbf16>, vector<8x256xf32> -> vector<8x256xf32>
    %18 = arith.addf %13, %17 : vector<8x256xf32>
    %c3 = arith.constant 3 : index
    %c0_14 = arith.constant 0 : index
    %c0_15 = arith.constant 0 : index
    %19 = vector.load %arg3[%c3, %c0_14, %c0_15] : memref<8x8x36xbf16, #tpu.memory_space<vmem>>, vector<1x8x36xbf16>
    %20 = vector.shape_cast %19 : vector<1x8x36xbf16> to vector<8x36xbf16>
    %21 = vector.extract_strided_slice %4 {offsets = [0, 768], sizes = [36, 256], strides = [1, 1]} : vector<36x2048xbf16> to vector<36x256xbf16>
    %cst_16 = arith.constant dense<0.000000e+00> : vector<8x256xf32>
    %22 = tpu.matmul %20, %21, %cst_16 {dimension_numbers = #tpu.dot_dimension_numbers<[1], [0], [0], [1], [0, 0, 1, 1], [], []>} : vector<8x36xbf16>, vector<36x256xbf16>, vector<8x256xf32> -> vector<8x256xf32>
    %23 = arith.addf %18, %22 : vector<8x256xf32>
    %c4 = arith.constant 4 : index
    %c0_17 = arith.constant 0 : index
    %c0_18 = arith.constant 0 : index
    %24 = vector.load %arg3[%c4, %c0_17, %c0_18] : memref<8x8x36xbf16, #tpu.memory_space<vmem>>, vector<1x8x36xbf16>
    %25 = vector.shape_cast %24 : vector<1x8x36xbf16> to vector<8x36xbf16>
    %26 = vector.extract_strided_slice %4 {offsets = [0, 1024], sizes = [36, 256], strides = [1, 1]} : vector<36x2048xbf16> to vector<36x256xbf16>
    %cst_19 = arith.constant dense<0.000000e+00> : vector<8x256xf32>
    %27 = tpu.matmul %25, %26, %cst_19 {dimension_numbers = #tpu.dot_dimension_numbers<[1], [0], [0], [1], [0, 0, 1, 1], [], []>} : vector<8x36xbf16>, vector<36x256xbf16>, vector<8x256xf32> -> vector<8x256xf32>
    %28 = arith.addf %23, %27 : vector<8x256xf32>
    %c5 = arith.constant 5 : index
    %c0_20 = arith.constant 0 : index
    %c0_21 = arith.constant 0 : index
    %29 = vector.load %arg3[%c5, %c0_20, %c0_21] : memref<8x8x36xbf16, #tpu.memory_space<vmem>>, vector<1x8x36xbf16>
    %30 = vector.shape_cast %29 : vector<1x8x36xbf16> to vector<8x36xbf16>
    %31 = vector.extract_strided_slice %4 {offsets = [0, 1280], sizes = [36, 256], strides = [1, 1]} : vector<36x2048xbf16> to vector<36x256xbf16>
    %cst_22 = arith.constant dense<0.000000e+00> : vector<8x256xf32>
    %32 = tpu.matmul %30, %31, %cst_22 {dimension_numbers = #tpu.dot_dimension_numbers<[1], [0], [0], [1], [0, 0, 1, 1], [], []>} : vector<8x36xbf16>, vector<36x256xbf16>, vector<8x256xf32> -> vector<8x256xf32>
    %33 = arith.addf %28, %32 : vector<8x256xf32>
    %c6 = arith.constant 6 : index
    %c0_23 = arith.constant 0 : index
    %c0_24 = arith.constant 0 : index
    %34 = vector.load %arg3[%c6, %c0_23, %c0_24] : memref<8x8x36xbf16, #tpu.memory_space<vmem>>, vector<1x8x36xbf16>
    %35 = vector.shape_cast %34 : vector<1x8x36xbf16> to vector<8x36xbf16>
    %36 = vector.extract_strided_slice %4 {offsets = [0, 1536], sizes = [36, 256], strides = [1, 1]} : vector<36x2048xbf16> to vector<36x256xbf16>
    %cst_25 = arith.constant dense<0.000000e+00> : vector<8x256xf32>
    %37 = tpu.matmul %35, %36, %cst_25 {dimension_numbers = #tpu.dot_dimension_numbers<[1], [0], [0], [1], [0, 0, 1, 1], [], []>} : vector<8x36xbf16>, vector<36x256xbf16>, vector<8x256xf32> -> vector<8x256xf32>
    %38 = arith.addf %33, %37 : vector<8x256xf32>
    %c7 = arith.constant 7 : index
    %c0_26 = arith.constant 0 : index
    %c0_27 = arith.constant 0 : index
    %39 = vector.load %arg3[%c7, %c0_26, %c0_27] : memref<8x8x36xbf16, #tpu.memory_space<vmem>>, vector<1x8x36xbf16>
    %40 = vector.shape_cast %39 : vector<1x8x36xbf16> to vector<8x36xbf16>
    %41 = vector.extract_strided_slice %4 {offsets = [0, 1792], sizes = [36, 256], strides = [1, 1]} : vector<36x2048xbf16> to vector<36x256xbf16>
    %cst_28 = arith.constant dense<0.000000e+00> : vector<8x256xf32>
    %42 = tpu.matmul %40, %41, %cst_28 {dimension_numbers = #tpu.dot_dimension_numbers<[1], [0], [0], [1], [0, 0, 1, 1], [], []>} : vector<8x36xbf16>, vector<36x256xbf16>, vector<8x256xf32> -> vector<8x256xf32>
    %43 = arith.addf %38, %42 : vector<8x256xf32>
    %c0_29 = arith.constant 0 : index
    %c0_30 = arith.constant 0 : index
    %44 = vector.load %arg4[%c0_29, %c0_30] : memref<1x256xf32, #tpu.memory_space<vmem>>, vector<1x256xf32>
    %45 = vector.broadcast %44 : vector<1x256xf32> to vector<8x256xf32>
    %46 = arith.addf %43, %45 : vector<8x256xf32>
    %cst_31 = arith.constant 0.000000e+00 : f32
    %47 = vector.broadcast %cst_31 : f32 to vector<8x256xf32>
    %48 = arith.maximumf %46, %47 : vector<8x256xf32>
    %49 = arith.truncf %48 : vector<8x256xf32> to vector<8x256xbf16>
    %c0_32 = arith.constant 0 : index
    %c0_33 = arith.constant 0 : index
    %50 = vector.load %arg5[%c0_32, %c0_33] : memref<256x1024xbf16, #tpu.memory_space<vmem>>, vector<256x1024xbf16>
    %cst_34 = arith.constant dense<0.000000e+00> : vector<8x1024xf32>
    %51 = tpu.matmul %49, %50, %cst_34 {dimension_numbers = #tpu.dot_dimension_numbers<[1], [0], [0], [1], [0, 0, 1, 1], [], []>} : vector<8x256xbf16>, vector<256x1024xbf16>, vector<8x1024xf32> -> vector<8x1024xf32>
    %52 = arith.truncf %51 : vector<8x1024xf32> to vector<8x1024xbf16>
    %c0_35 = arith.constant 0 : index
    %c0_36 = arith.constant 0 : index
    %c0_37 = arith.constant 0 : index
    %53 = vector.load %arg6[%c0_35, %c0_36, %c0_37] : memref<4x8x8xbf16, #tpu.memory_space<vmem>>, vector<1x8x8xbf16>
    %54 = vector.shape_cast %53 : vector<1x8x8xbf16> to vector<8x8xbf16>
    %55 = vector.extract_strided_slice %52 {offsets = [0, 0], sizes = [8, 256], strides = [1, 1]} : vector<8x1024xbf16> to vector<8x256xbf16>
    %cst_38 = arith.constant dense<0.000000e+00> : vector<8x256xf32>
    %56 = tpu.matmul %54, %55, %cst_38 {dimension_numbers = #tpu.dot_dimension_numbers<[1], [0], [0], [1], [0, 0, 1, 1], [], []>} : vector<8x8xbf16>, vector<8x256xbf16>, vector<8x256xf32> -> vector<8x256xf32>
    %c1_39 = arith.constant 1 : index
    %c0_40 = arith.constant 0 : index
    %c0_41 = arith.constant 0 : index
    %57 = vector.load %arg6[%c1_39, %c0_40, %c0_41] : memref<4x8x8xbf16, #tpu.memory_space<vmem>>, vector<1x8x8xbf16>
    %58 = vector.shape_cast %57 : vector<1x8x8xbf16> to vector<8x8xbf16>
    %59 = vector.extract_strided_slice %52 {offsets = [0, 256], sizes = [8, 256], strides = [1, 1]} : vector<8x1024xbf16> to vector<8x256xbf16>
    %cst_42 = arith.constant dense<0.000000e+00> : vector<8x256xf32>
    %60 = tpu.matmul %58, %59, %cst_42 {dimension_numbers = #tpu.dot_dimension_numbers<[1], [0], [0], [1], [0, 0, 1, 1], [], []>} : vector<8x8xbf16>, vector<8x256xbf16>, vector<8x256xf32> -> vector<8x256xf32>
    %61 = arith.addf %56, %60 : vector<8x256xf32>
    %c2_43 = arith.constant 2 : index
    %c0_44 = arith.constant 0 : index
    %c0_45 = arith.constant 0 : index
    %62 = vector.load %arg6[%c2_43, %c0_44, %c0_45] : memref<4x8x8xbf16, #tpu.memory_space<vmem>>, vector<1x8x8xbf16>
    %63 = vector.shape_cast %62 : vector<1x8x8xbf16> to vector<8x8xbf16>
    %64 = vector.extract_strided_slice %52 {offsets = [0, 512], sizes = [8, 256], strides = [1, 1]} : vector<8x1024xbf16> to vector<8x256xbf16>
    %cst_46 = arith.constant dense<0.000000e+00> : vector<8x256xf32>
    %65 = tpu.matmul %63, %64, %cst_46 {dimension_numbers = #tpu.dot_dimension_numbers<[1], [0], [0], [1], [0, 0, 1, 1], [], []>} : vector<8x8xbf16>, vector<8x256xbf16>, vector<8x256xf32> -> vector<8x256xf32>
    %66 = arith.addf %61, %65 : vector<8x256xf32>
    %c3_47 = arith.constant 3 : index
    %c0_48 = arith.constant 0 : index
    %c0_49 = arith.constant 0 : index
    %67 = vector.load %arg6[%c3_47, %c0_48, %c0_49] : memref<4x8x8xbf16, #tpu.memory_space<vmem>>, vector<1x8x8xbf16>
    %68 = vector.shape_cast %67 : vector<1x8x8xbf16> to vector<8x8xbf16>
    %69 = vector.extract_strided_slice %52 {offsets = [0, 768], sizes = [8, 256], strides = [1, 1]} : vector<8x1024xbf16> to vector<8x256xbf16>
    %cst_50 = arith.constant dense<0.000000e+00> : vector<8x256xf32>
    %70 = tpu.matmul %68, %69, %cst_50 {dimension_numbers = #tpu.dot_dimension_numbers<[1], [0], [0], [1], [0, 0, 1, 1], [], []>} : vector<8x8xbf16>, vector<8x256xbf16>, vector<8x256xf32> -> vector<8x256xf32>
    %71 = arith.addf %66, %70 : vector<8x256xf32>
    %c0_51 = arith.constant 0 : index
    %c0_52 = arith.constant 0 : index
    %72 = vector.load %arg7[%c0_51, %c0_52] : memref<1x256xf32, #tpu.memory_space<vmem>>, vector<1x256xf32>
    %73 = vector.broadcast %72 : vector<1x256xf32> to vector<8x256xf32>
    %74 = arith.addf %71, %73 : vector<8x256xf32>
    %cst_53 = arith.constant 0.000000e+00 : f32
    %75 = vector.broadcast %cst_53 : f32 to vector<8x256xf32>
    %76 = arith.maximumf %74, %75 : vector<8x256xf32>
    %77 = arith.truncf %76 : vector<8x256xf32> to vector<8x256xbf16>
    %c0_54 = arith.constant 0 : index
    %c0_55 = arith.constant 0 : index
    %78 = vector.load %arg8[%c0_54, %c0_55] : memref<256x384xbf16, #tpu.memory_space<vmem>>, vector<256x384xbf16>
    %cst_56 = arith.constant dense<0.000000e+00> : vector<8x384xf32>
    %79 = tpu.matmul %77, %78, %cst_56 {dimension_numbers = #tpu.dot_dimension_numbers<[1], [0], [0], [1], [0, 0, 1, 1], [], []>} : vector<8x256xbf16>, vector<256x384xbf16>, vector<8x384xf32> -> vector<8x384xf32>
    %80 = arith.truncf %79 : vector<8x384xf32> to vector<8x384xbf16>
    %c0_57 = arith.constant 0 : index
    %c0_58 = arith.constant 0 : index
    %c0_59 = arith.constant 0 : index
    %81 = vector.load %arg9[%c0_57, %c0_58, %c0_59] : memref<3x8x8xbf16, #tpu.memory_space<vmem>>, vector<1x8x8xbf16>
    %82 = vector.shape_cast %81 : vector<1x8x8xbf16> to vector<8x8xbf16>
    %83 = vector.extract_strided_slice %80 {offsets = [0, 0], sizes = [8, 128], strides = [1, 1]} : vector<8x384xbf16> to vector<8x128xbf16>
    %cst_60 = arith.constant dense<0.000000e+00> : vector<8x128xf32>
    %84 = tpu.matmul %82, %83, %cst_60 {dimension_numbers = #tpu.dot_dimension_numbers<[1], [0], [0], [1], [0, 0, 1, 1], [], []>} : vector<8x8xbf16>, vector<8x128xbf16>, vector<8x128xf32> -> vector<8x128xf32>
    %c1_61 = arith.constant 1 : index
    %c0_62 = arith.constant 0 : index
    %c0_63 = arith.constant 0 : index
    %85 = vector.load %arg9[%c1_61, %c0_62, %c0_63] : memref<3x8x8xbf16, #tpu.memory_space<vmem>>, vector<1x8x8xbf16>
    %86 = vector.shape_cast %85 : vector<1x8x8xbf16> to vector<8x8xbf16>
    %87 = vector.extract_strided_slice %80 {offsets = [0, 128], sizes = [8, 128], strides = [1, 1]} : vector<8x384xbf16> to vector<8x128xbf16>
    %cst_64 = arith.constant dense<0.000000e+00> : vector<8x128xf32>
    %88 = tpu.matmul %86, %87, %cst_64 {dimension_numbers = #tpu.dot_dimension_numbers<[1], [0], [0], [1], [0, 0, 1, 1], [], []>} : vector<8x8xbf16>, vector<8x128xbf16>, vector<8x128xf32> -> vector<8x128xf32>
    %89 = arith.addf %84, %88 : vector<8x128xf32>
    %c2_65 = arith.constant 2 : index
    %c0_66 = arith.constant 0 : index
    %c0_67 = arith.constant 0 : index
    %90 = vector.load %arg9[%c2_65, %c0_66, %c0_67] : memref<3x8x8xbf16, #tpu.memory_space<vmem>>, vector<1x8x8xbf16>
    %91 = vector.shape_cast %90 : vector<1x8x8xbf16> to vector<8x8xbf16>
    %92 = vector.extract_strided_slice %80 {offsets = [0, 256], sizes = [8, 128], strides = [1, 1]} : vector<8x384xbf16> to vector<8x128xbf16>
    %cst_68 = arith.constant dense<0.000000e+00> : vector<8x128xf32>
    %93 = tpu.matmul %91, %92, %cst_68 {dimension_numbers = #tpu.dot_dimension_numbers<[1], [0], [0], [1], [0, 0, 1, 1], [], []>} : vector<8x8xbf16>, vector<8x128xbf16>, vector<8x128xf32> -> vector<8x128xf32>
    %94 = arith.addf %89, %93 : vector<8x128xf32>
    %c0_69 = arith.constant 0 : index
    %c0_70 = arith.constant 0 : index
    %95 = vector.load %arg10[%c0_69, %c0_70] : memref<1x128xf32, #tpu.memory_space<vmem>>, vector<1x128xf32>
    %96 = vector.broadcast %95 : vector<1x128xf32> to vector<8x128xf32>
    %97 = arith.addf %94, %96 : vector<8x128xf32>
    %cst_71 = arith.constant 0.000000e+00 : f32
    %98 = vector.broadcast %cst_71 : f32 to vector<8x128xf32>
    %99 = arith.maximumf %97, %98 : vector<8x128xf32>
    %100 = arith.truncf %99 : vector<8x128xf32> to vector<8x128xbf16>
    %c0_72 = arith.constant 0 : index
    %c0_73 = arith.constant 0 : index
    %101 = vector.load %arg11[%c0_72, %c0_73] : memref<128x512xbf16, #tpu.memory_space<vmem>>, vector<128x512xbf16>
    %cst_74 = arith.constant dense<0.000000e+00> : vector<8x512xf32>
    %102 = tpu.matmul %100, %101, %cst_74 {dimension_numbers = #tpu.dot_dimension_numbers<[1], [0], [0], [1], [0, 0, 1, 1], [], []>} : vector<8x128xbf16>, vector<128x512xbf16>, vector<8x512xf32> -> vector<8x512xf32>
    %c0_75 = arith.constant 0 : index
    %c0_76 = arith.constant 0 : index
    %103 = vector.load %arg12[%c0_75, %c0_76] : memref<1x512xf32, #tpu.memory_space<vmem>>, vector<1x512xf32>
    %104 = vector.broadcast %103 : vector<1x512xf32> to vector<8x512xf32>
    %105 = arith.addf %102, %104 : vector<8x512xf32>
    %cst_77 = arith.constant 0.000000e+00 : f32
    %106 = vector.broadcast %cst_77 : f32 to vector<8x512xf32>
    %107 = arith.maximumf %105, %106 : vector<8x512xf32>
    %108 = arith.truncf %107 : vector<8x512xf32> to vector<8x512xbf16>
    %c0_78 = arith.constant 0 : index
    %c0_79 = arith.constant 0 : index
    %109 = vector.load %arg13[%c0_78, %c0_79] : memref<512x128xbf16, #tpu.memory_space<vmem>>, vector<512x128xbf16>
    %cst_80 = arith.constant dense<0.000000e+00> : vector<8x128xf32>
    %110 = tpu.matmul %108, %109, %cst_80 {dimension_numbers = #tpu.dot_dimension_numbers<[1], [0], [0], [1], [0, 0, 1, 1], [], []>} : vector<8x512xbf16>, vector<512x128xbf16>, vector<8x128xf32> -> vector<8x128xf32>
    %c0_81 = arith.constant 0 : index
    %c0_82 = arith.constant 0 : index
    %111 = vector.load %arg14[%c0_81, %c0_82] : memref<1x128xf32, #tpu.memory_space<vmem>>, vector<1x128xf32>
    %112 = vector.broadcast %111 : vector<1x128xf32> to vector<8x128xf32>
    %113 = arith.addf %110, %112 : vector<8x128xf32>
    %c0_83 = arith.constant 0 : index
    %c0_84 = arith.constant 0 : index
    %c0_85 = arith.constant 0 : index
    %114 = vector.load %arg15[%c0_83, %c0_84, %c0_85] : memref<1x8x128xf32, #tpu.memory_space<vmem>>, vector<1x8x128xf32>
    %115 = vector.shape_cast %114 : vector<1x8x128xf32> to vector<8x128xf32>
    %116 = vector.shape_cast %113 : vector<8x128xf32> to vector<1x8x128xf32>
    tpu.vector_store %arg15[%c0_83, %c0_84, %c0_85], %116 {strides = array<i32>} : memref<1x8x128xf32, #tpu.memory_space<vmem>>, vector<1x8x128xf32>,
    return
  }
  func.func @transform_0(%arg0: i32) -> (i32, i32, i32) {
    %c0_i32 = arith.constant 0 : i32
    %c0_i32_0 = arith.constant 0 : i32
    %c0_i32_1 = arith.constant 0 : i32
    return %arg0, %c0_i32, %c0_i32_0 : i32, i32, i32
  }
  func.func @transform_1(%arg0: i32) -> (i32, i32) {
    %c0_i32 = arith.constant 0 : i32
    %c0_i32_0 = arith.constant 0 : i32
    %c0_i32_1 = arith.constant 0 : i32
    return %c0_i32, %c0_i32_0 : i32, i32
  }
  func.func @transform_2(%arg0: i32) -> (i32, i32, i32) {
    %c0_i32 = arith.constant 0 : i32
    %c0_i32_0 = arith.constant 0 : i32
    %c0_i32_1 = arith.constant 0 : i32
    %c0_i32_2 = arith.constant 0 : i32
    return %c0_i32, %c0_i32_0, %c0_i32_1 : i32, i32, i32
  }
  func.func @transform_3(%arg0: i32) -> (i32, i32) {
    %c0_i32 = arith.constant 0 : i32
    %c0_i32_0 = arith.constant 0 : i32
    %c0_i32_1 = arith.constant 0 : i32
    return %c0_i32, %c0_i32_0 : i32, i32
  }
  func.func @transform_4(%arg0: i32) -> (i32, i32) {
    %c0_i32 = arith.constant 0 : i32
    %c0_i32_0 = arith.constant 0 : i32
    %c0_i32_1 = arith.constant 0 : i32
    return %c0_i32, %c0_i32_0 : i32, i32
  }
  func.func @transform_5(%arg0: i32) -> (i32, i32, i32) {
    %c0_i32 = arith.constant 0 : i32
    %c0_i32_0 = arith.constant 0 : i32
    %c0_i32_1 = arith.constant 0 : i32
    %c0_i32_2 = arith.constant 0 : i32
    return %c0_i32, %c0_i32_0, %c0_i32_1 : i32, i32, i32
  }
  func.func @transform_6(%arg0: i32) -> (i32, i32) {
    %c0_i32 = arith.constant 0 : i32
    %c0_i32_0 = arith.constant 0 : i32
    %c0_i32_1 = arith.constant 0 : i32
    return %c0_i32, %c0_i32_0 : i32, i32
  }
  func.func @transform_7(%arg0: i32) -> (i32, i32) {
    %c0_i32 = arith.constant 0 : i32
    %c0_i32_0 = arith.constant 0 : i32
    %c0_i32_1 = arith.constant 0 : i32
    return %c0_i32, %c0_i32_0 : i32, i32
  }
  func.func @transform_8(%arg0: i32) -> (i32, i32, i32) {
    %c0_i32 = arith.constant 0 : i32
    %c0_i32_0 = arith.constant 0 : i32
    %c0_i32_1 = arith.constant 0 : i32
    %c0_i32_2 = arith.constant 0 : i32
    return %c0_i32, %c0_i32_0, %c0_i32_1 : i32, i32, i32
  }
  func.func @transform_9(%arg0: i32) -> (i32, i32) {
    %c0_i32 = arith.constant 0 : i32
    %c0_i32_0 = arith.constant 0 : i32
    %c0_i32_1 = arith.constant 0 : i32
    return %c0_i32, %c0_i32_0 : i32, i32
  }
  func.func @transform_10(%arg0: i32) -> (i32, i32) {
    %c0_i32 = arith.constant 0 : i32
    %c0_i32_0 = arith.constant 0 : i32
    %c0_i32_1 = arith.constant 0 : i32
    return %c0_i32, %c0_i32_0 : i32, i32
  }
  func.func @transform_11(%arg0: i32) -> (i32, i32) {
    %c0_i32 = arith.constant 0 : i32
    %c0_i32_0 = arith.constant 0 : i32
    %c0_i32_1 = arith.constant 0 : i32
    return %c0_i32, %c0_i32_0 : i32, i32
  }
  func.func @transform_12(%arg0: i32) -> (i32, i32) {
    %c0_i32 = arith.constant 0 : i32
    %c0_i32_0 = arith.constant 0 : i32
    %c0_i32_1 = arith.constant 0 : i32
    return %c0_i32, %c0_i32_0 : i32, i32
  }
  func.func @transform_13(%arg0: i32) -> (i32, i32) {
    %c0_i32 = arith.constant 0 : i32
    %c0_i32_0 = arith.constant 0 : i32
    %c0_i32_1 = arith.constant 0 : i32
    return %c0_i32, %c0_i32_0 : i32, i32
  }
  func.func @transform_14(%arg0: i32) -> (i32, i32, i32) {
    %c0_i32 = arith.constant 0 : i32
    %c0_i32_0 = arith.constant 0 : i32
    %c0_i32_1 = arith.constant 0 : i32
    return %arg0, %c0_i32, %c0_i32_0 : i32, i32, i32
  }
}

</mosaic_0001>

<bundles_post_ra>
// kernel: convnet_pv_forward.1
= control target key start
LH: loop header
LB: loop body
LE: loop exit
PB: predicated region body
PF: predicated region fallthrough
CT: control target
= control target key end

     0   :  { %s5708_s0 = inlined_call_operand.vmem [shape: bf16[2,36,36], index: 0, kind: input, shape index: {}]   ;;  %s5709_s1 = inlined_call_operand.hbm [shape: bf16[36,2048], index: 1, kind: input, shape index: {}]   ;;  %s5710_s2 = inlined_call_operand.vmem [shape: bf16[8,8,36], index: 2, kind: input, shape index: {}]   ;;  %s5711_s3 = inlined_call_operand.vmem [shape: f32[1,256], index: 3, kind: input, shape index: {}]   ;;  %s5712_s4 = inlined_call_operand.hbm [shape: bf16[256,1024], index: 4, kind: input, shape index: {}]   ;;  %s5713_s5 = inlined_call_operand.vmem [shape: bf16[4,8,8], index: 5, kind: input, shape index: {}]   ;;  %s5714_s6 = inlined_call_operand.vmem [shape: f32[1,256], index: 6, kind: input, shape index: {}]   ;;  %s5715_s7 = inlined_call_operand.hbm [shape: bf16[256,384], index: 7, kind: input, shape index: {}]   ;;  %s5716_s8 = inlined_call_operand.vmem [shape: bf16[3,8,8], index: 8, kind: input, shape index: {}]   ;;  %s5717_s9 = inlined_call_operand.vmem [shape: f32[1,128], index: 9, kind: input, shape index: {}]   ;;  %s5718_s10 = inlined_call_operand.hbm [shape: bf16[128,512], index: 10, kind: input, shape index: {}]   ;;  %s5719_s11 = inlined_call_operand.vmem [shape: f32[1,512], index: 11, kind: input, shape index: {}]   ;;  %s5720_s12 = inlined_call_operand.hbm [shape: bf16[512,128], index: 12, kind: input, shape index: {}]   ;;  %s5721_s13 = inlined_call_operand.vmem [shape: f32[1,128], index: 13, kind: input, shape index: {}]   ;;  %s5722_s14 = inlined_call_operand.vmem [shape: f32[2,8,128], index: 14, kind: output, shape index: {}]  }
   0x1   :  { %5727 = sst [smem:[#allocation14_spill]] %s5721_s13 }
   0x2   :  { %5728 = sst [smem:[#allocation15_spill]] %s5722_s14 }
   0x3   :  { %19 = vsyncpa [#allocation3], 0 }
   0x4   :  { %20 = vsyncpa [#allocation5], 0 }
   0x5   :  { %21 = vsyncpa [#allocation8], 0  ;;  %s5278_s29 = smov 0  }
   0x6 LB: > { %5729 = sst [smem:[#allocation13_spill]] %s5184_s29  ;;  %s5186_s30 = smov [#allocation4]   ;;  %s5184_s29 = sphi %s5278_s29, %s27_s29  }
   0x7   : > { %s388_s15 = sshll.u32 %s5186_s30, 4  ;;  %s5284_s16 = sadd.s32 4294967295, %s5184_s29   ;;  %s5289_s15 = int_to_ptr.vmem [resolvable:$true] %s388_s15 }
   0x8   : > { %p4320_p0 = scmp.ge.s32.totalorder %s5184_s29, 1  ;;  %p357_p1 = scmp.lt.s32.totalorder %s5184_s29, 3 }
   0x9   : > { %p5724_p2 = scmp.eq.s32.totalorder %s5284_s16, 0  ;;  %s5187_s18 = smov [#allocation7]  }
   0xa   : > { %p5291_p3 = pnand %p4320_p0, %p357_p1  ;;  %s426_s19 = sshll.u32 %s5187_s18, 4  ;;  %s5297_s19 = int_to_ptr.vmem [resolvable:$true] %s426_s19 }
   0xb   : > { %s5188_s21 = smov [#allocation2]   ;;  %s5026_s25 = scalar_lea.hbm %s5712_s4, 16384 }
   0xc   : > { %s5730_s17 = scalar_select %p5291_p3, 1, 0 }
   0xd   : > { %p4812_p4 = pneg %p5291_p3  ;;  %s5305_s22 = sshll.u32 %s5188_s21, 4  ;;  %s370_s22 = int_to_ptr.vmem [resolvable:$true] %s5305_s22 }
   0xe   : > { %p5027_p6 = scmp.ne.s32.totalorder %s5712_s4, %s5026_s25  ;;  %p5033_p10 = scmp.lt.u32.totalorder %s5026_s25, %s5712_s4 }
   0xf   : > { %p5301_p5 = pnand %p5724_p2, %p4812_p4 }
  0x11   : > { %p5315_p7 = pneg %p5301_p5 }
  0x13   : > { %p5029_p8 = pnand %p5315_p7, %p5027_p6 }
  0x15   : > { %p5030_p9 = pneg %p5029_p8 }
  0x17   : > { %p5035_p11 = pnand %p5033_p10, %p5030_p9 }
  0x19   : > { %5038 = shalt.err (!%p5035_p11)
}
  0x1a   : > { %s5039_s21 = scalar_lea.vmem %s5289_s15, 16384  ;;  %p5047_p1 = scmp.lt.s32.totalorder %s5289_s15, %s5289_s15 }
  0x1b   : > { %p5040_p12 = scmp.ne.s32.totalorder %s5289_s15, %s5039_s21  ;;  %p5048_p4 = scmp.lt.s32.totalorder %s5039_s21, %s5039_s21 }
  0x1d   : > { %p5042_p13 = pnand %p5040_p12, %p5315_p7  ;;  %p5049_p6 = por %p5048_p4, %p5047_p1 }
  0x1f   : > { %p5043_p0 = pneg %p5042_p13 }
  0x21   : > { %p5050_p8 = pnand %p5049_p6, %p5043_p0 }
  0x23   : > { %5053 = shalt.err (!%p5050_p8)
}
  0x24   : > { %s5189_s23 = smov 512   ;;  %s5190_s24 = smov 32  }
  0x25   : > { %4818 = dma.hbm_to_vmem [thread:$0]  (!%p5301_p5), %s5712_s4, 16384, %s5289_s15, [#allocation5], %s5189_s23, %s5189_s23, %s5190_s24  }
  0x26   : > { %s5054_s18 = scalar_lea.hbm %s5718_s10, 4096 }
  0x27   : > { %p5055_p9 = scmp.ne.s32.totalorder %s5718_s10, %s5054_s18  ;;  %p5061_p12 = scmp.lt.u32.totalorder %s5054_s18, %s5718_s10 }
  0x29   : > { %p5057_p10 = pnand %p5055_p9, %p5315_p7 }
  0x2b   : > { %p5058_p11 = pneg %p5057_p10 }
  0x2d   : > { %p5063_p13 = pnand %p5061_p12, %p5058_p11 }
  0x2f   : > { %5066 = shalt.err (!%p5063_p13)
}
  0x30   : > { %s5067_s15 = scalar_lea.vmem %s5297_s19, 4096  ;;  %p5075_p6 = scmp.lt.s32.totalorder %s5297_s19, %s5297_s19 }
  0x31   : > { %p5068_p0 = scmp.ne.s32.totalorder %s5297_s19, %s5067_s15  ;;  %p5076_p8 = scmp.lt.s32.totalorder %s5067_s15, %s5067_s15 }
  0x33   : > { %p5070_p1 = pnand %p5068_p0, %p5315_p7  ;;  %p5077_p9 = por %p5076_p8, %p5075_p6 }
  0x35   : > { %p5071_p4 = pneg %p5070_p1 }
  0x37   : > { %p5078_p10 = pnand %p5077_p9, %p5071_p4 }
  0x39   : > { %5081 = shalt.err (!%p5078_p10)
}
  0x3a   : > { %s5191_s14 = smov 256   ;;  %s5192_s13 = smov 16  }
  0x3b   : > { %4824 = dma.hbm_to_vmem [thread:$0]  (!%p5301_p5), %s5718_s10, 4096, %s5297_s19, [#allocation8], %s5191_s14, %s5191_s14, %s5192_s13  }
  0x3c   : > { %s5082_s26 = scalar_lea.hbm %s5709_s1, 5120 }
  0x3d   : > { %p5083_p11 = scmp.ne.s32.totalorder %s5709_s1, %s5082_s26  ;;  %p5089_p0 = scmp.lt.u32.totalorder %s5082_s26, %s5709_s1 }
  0x3f   : > { %p5085_p12 = pnand %p5083_p11, %p5315_p7 }
  0x41   : > { %p5086_p13 = pneg %p5085_p12 }
  0x43   : > { %p5091_p1 = pnand %p5089_p0, %p5086_p13 }
  0x45   : > { %5094 = shalt.err (!%p5091_p1)
}
  0x46   : > { %s5095_s15 = scalar_lea.vmem %s370_s22, 5120  ;;  %p5103_p9 = scmp.lt.s32.totalorder %s370_s22, %s370_s22 }
  0x47   : > { %p5096_p4 = scmp.ne.s32.totalorder %s370_s22, %s5095_s15  ;;  %p5104_p10 = scmp.lt.s32.totalorder %s5095_s15, %s5095_s15 }
  0x49   : > { %p5098_p6 = pnand %p5096_p4, %p5315_p7  ;;  %p5105_p2 = por %p5104_p10, %p5103_p9 }
  0x4b   : > { %p5099_p8 = pneg %p5098_p6 }
  0x4d   : > { %p5106_p3 = pnand %p5105_p2, %p5099_p8 }
  0x4f   : > { %5109 = shalt.err (!%p5106_p3)
}
  0x50   : > { %s5193_s19 = smov 1024   ;;  %s5726_s14 = smov 64  }
  0x51   : > { %4815 = dma.hbm_to_vmem [thread:$0]  (!%p5301_p5), %s5709_s1, 5120, %s370_s22, [#allocation3], %s5193_s19, %s5193_s19, %s5726_s14  }
  0x52   : > { %s5195_s23 = smov [#allocation6]   ;;  %s5110_s27 = scalar_lea.hbm %s5715_s7, 6144 }
  0x53   : > { %s407_s24 = sshll.u32 %s5195_s23, 4  ;;  %p5111_p2 = scmp.ne.s32.totalorder %s5715_s7, %s5110_s27  ;;  %s408_s24 = int_to_ptr.vmem [resolvable:$true] %s407_s24 }
  0x54   : > { %p5117_p12 = scmp.lt.u32.totalorder %s5110_s27, %s5715_s7 }
  0x55   : > { %p5113_p3 = pnand %p5111_p2, %p5315_p7 }
  0x57   : > { %p5114_p11 = pneg %p5113_p3 }
  0x59   : > { %p5119_p13 = pnand %p5117_p12, %p5114_p11 }
  0x5b   : > { %5122 = shalt.err (!%p5119_p13)
}
  0x5c   : > { %s5123_s22 = scalar_lea.vmem %s408_s24, 6144  ;;  %p5131_p6 = scmp.lt.s32.totalorder %s408_s24, %s408_s24 }
  0x5d   : > { %p5124_p0 = scmp.ne.s32.totalorder %s408_s24, %s5123_s22  ;;  %p5132_p8 = scmp.lt.s32.totalorder %s5123_s22, %s5123_s22 }
  0x5f   : > { %p5126_p1 = pnand %p5124_p0, %p5315_p7  ;;  %p5133_p9 = por %p5132_p8, %p5131_p6 }
  0x61   : > { %p5127_p4 = pneg %p5126_p1 }
  0x63   : > { %p5134_p10 = pnand %p5133_p9, %p5127_p4 }
  0x65   : > { %5137 = shalt.err (!%p5134_p10)
}
  0x66   : > { %s5196_s19 = smov 192   ;;  %s5197_s13 = smov 12  }
  0x67   : > { %4821 = dma.hbm_to_vmem [thread:$0]  (!%p5301_p5), %s5715_s7, 6144, %s408_s24, [#allocation5], %s5196_s19, %s5196_s19, %s5197_s13  }
  0x68   : > { %s5198_s25 = smov [#allocation9]   ;;  %s5138_s18 = scalar_lea.hbm %s5720_s12, 4096 }
  0x69   : > { %s442_s26 = sshll.u32 %s5198_s25, 4  ;;  %p5139_p2 = scmp.ne.s32.totalorder %s5720_s12, %s5138_s18  ;;  %s443_s26 = int_to_ptr.vmem [resolvable:$true] %s442_s26 }
  0x6a   : > { %p5145_p12 = scmp.lt.u32.totalorder %s5138_s18, %s5720_s12 }
  0x6b   : > { %p5141_p3 = pnand %p5139_p2, %p5315_p7 }
  0x6d   : > { %p5142_p11 = pneg %p5141_p3 }
  0x6f   : > { %p5147_p13 = pnand %p5145_p12, %p5142_p11 }
  0x71   : > { %5150 = shalt.err (!%p5147_p13)
}
  0x72   : > { %s5151_s24 = scalar_lea.vmem %s443_s26, 4096  ;;  %p5159_p6 = scmp.lt.s32.totalorder %s443_s26, %s443_s26 }
  0x73   : > { %p5152_p0 = scmp.ne.s32.totalorder %s443_s26, %s5151_s24  ;;  %p5160_p8 = scmp.lt.s32.totalorder %s5151_s24, %s5151_s24 }
  0x75   : > { %p5154_p1 = pnand %p5152_p0, %p5315_p7  ;;  %p5161_p9 = por %p5160_p8, %p5159_p6 }
  0x77   : > { %p5155_p4 = pneg %p5154_p1 }
  0x79   : > { %p5162_p10 = pnand %p5161_p9, %p5155_p4 }
  0x7b   : > { %5165 = shalt.err (!%p5162_p10)
}
  0x7c   : > { %s5199_s19 = smov 4   ;;  %s5733_s13 = smov 64  }
  0x7d   : > { %4827 = dma.hbm_to_vmem [thread:$0]  (!%p5301_p5), %s5720_s12, 4096, %s443_s26, [#allocation8], %s5733_s13, %s5733_s13, %s5199_s19  }
  0x7e   : > { %p5734_p2 = scmp.ne.s32.totalorder %s5730_s17, 0 }
  0x7f   : > { %p5735_p7 = scmp.eq.s32.totalorder (!%p5734_p2), %s5284_s16, 0 }
  0x80   : > { %469 = sbr.rel (%p5734_p2) target bundleno = 2092 (0x82c), region = 76 }
  0x87   : > { %5171 = dma.done.wait (%p5735_p7), [#allocation3], 5120   ;;  %p5736_p3 = pmov %p5735_p7 }
  0x89   : > { %5173 = vsyncadd (%p5736_p3), [#allocation3], 4294962176  ;;  %p5737_p11 = pmov %p5736_p3 }
  0x8a   : > { %p5738_p12 = pmov %p5736_p3 }
  0x8b   : > { %5175 = dma.done.wait (%p5737_p11), [#allocation5], 22528  }
  0x8c   : > { %5177 = vsyncadd (%p5738_p12), [#allocation5], 4294944768  ;;  %p5739_p13 = pmov %p5736_p3 }
  0x8d   : > { %p5740_p5 = pmov %p5736_p3 }
  0x8e   : > { %5179 = dma.done.wait (%p5739_p13), [#allocation8], 8192  }
  0x8f   : > { %5181 = vsyncadd (%p5740_p5), [#allocation8], 4294959104  ;;  %p530_p0 = scmp.lt.s32.totalorder %s5284_s16, 1  ;;  %v5200_v0 = vmov 0   ;;  %v545_v1 = vld [vmem:[#allocation2] sm:$0xff]  ;;  %v546_v3 = vld [vmem:[#allocation2 + $0x8] sm:$0xff] }
  0x90   : > { %889 = vmatprep.mubr.bf16.mxu0 %v5200_v0  ;;  %950 = vmatprep.mubr.bf16.mxu1 %v5200_v0  ;;  %v553_v2 = vld [vmem:[#allocation2 + $0x40] sm:$0xff]  ;;  %v554_v5 = vld [vmem:[#allocation2 + $0x48] sm:$0xff]  ;;  %vm808_vm0 = vcmask 1041408   ;;  %v547_v23 = vld [vmem:[#allocation2 + $0x10] sm:$0xff]  ;;  %vm798_vm1 = vcmask 293888   ;;  %vm2785_vm2 = vcmask 1043456  }
  0x91   : > { %s5745_s16 = smov (!%p530_p0, %s5284_s16), 1  ;;  %v4339_v4 = vcombine.high %v545_v1, %v553_v2  ;;  %v4338_v6 = vcombine.low %v545_v1, %v553_v2  ;;  %v561_v7 = vld [vmem:[#allocation2 + $0x80] sm:$0xff]  ;;  %v4341_v9 = vcombine.high %v546_v3, %v554_v5  ;;  %v4340_v10 = vcombine.low %v546_v3, %v554_v5  ;;  %v562_v12 = vld [vmem:[#allocation2 + $0x88] sm:$0xff]  ;;  %v555_v24 = vld [vmem:[#allocation2 + $0x50] sm:$0xff]  ;;  %s5741_s15 = sld [smem:[#allocation14_spill]] }
  0x92   : > { %s4791_s17 = smul.u32 20, %s5745_s16  ;;  %v569_v8 = vld [vmem:[#allocation2 + $0xc0] sm:$0xff]  ;;  %v570_v13 = vld [vmem:[#allocation2 + $0xc8] sm:$0xff]  ;;  %v548_v25 = vld [vmem:[#allocation2 + $0x18] sm:$0xff]  ;;  %v4343_v28 = vcombine.high %v547_v23, %v555_v24  ;;  %v4342_v34 = vcombine.low %v547_v23, %v555_v24  ;;  %vm2781_vm3 = vcmask 64512   ;;  %vm5202_vm4 = vmmov 0  }
  0x93   : > { %v4355_v11 = vcombine.high %v561_v7, %v569_v8  ;;  %v577_v14 = vld [vmem:[#allocation2 + $0x100] sm:$0x33]  ;;  %857 = vmatprep.subr.bf16.mxu0 %v4339_v4  ;;  %v4357_v15 = vcombine.high %v562_v12, %v570_v13  ;;  %v578_v16 = vld [vmem:[#allocation2 + $0x108] sm:$0x33]  ;;  %918 = vmatprep.subr.bf16.mxu1 %v4341_v9  ;;  %v4354_v17 = vcombine.low %v561_v7, %v569_v8  ;;  %v556_v26 = vld [vmem:[#allocation2 + $0x58] sm:$0xff]  ;;  %s4334_s22 = sshll.u32 %s5745_s16, 3 }
  0x94   : > { %s5441_s23 = scalar_lea.vmem %s5708_s0, %s4791_s17  ;;  %858 = vmatpush1.bf16.msra.mxu0 %v4338_v6  ;;  %919 = vmatpush1.bf16.msra.mxu1 %v4340_v10  ;;  %v4356_v18 = vcombine.low %v562_v12, %v570_v13  ;;  %v4371_v19 = vcombine.high %v577_v14, %v577_v14  ;;  %v4370_v20 = vcombine.low %v577_v14, %v577_v14  ;;  %v563_v32 = vld [vmem:[#allocation2 + $0x90] sm:$0xff]  ;;  %v564_v35 = vld [vmem:[#allocation2 + $0x98] sm:$0xff]  ;;  %v549_v45 = vld [vmem:[#allocation2 + $0x20] sm:$0xff]  ;;  %s5742_s13 = sld [smem:[#allocation15_spill]] }
  0x95   : > { %859 = vmatprep.subr.bf16.mxu0 %v4355_v11  ;;  %920 = vmatprep.subr.bf16.mxu1 %v4357_v15  ;;  %v4373_v21 = vcombine.high %v578_v16, %v578_v16  ;;  %v4372_v22 = vcombine.low %v578_v16, %v578_v16  ;;  %v4345_v30 = vcombine.high %v548_v25, %v556_v26  ;;  %v5448_v31 = vld [vmem:[%s5441_s23] sm:$0xff]   ;;  %v571_v33 = vld [vmem:[#allocation2 + $0xd0] sm:$0xff]  ;;  %v572_v36 = vld [vmem:[#allocation2 + $0xd8] sm:$0xff] }
  0x96   : > { %v810_v27 = vsel %vm808_vm0, %v4370_v20, 0  ;;  %v4344_v37 = vcombine.low %v548_v25, %v556_v26  ;;  %v4359_v38 = vcombine.high %v563_v32, %v571_v33  ;;  %v579_v39 = vld [vmem:[#allocation2 + $0x110] sm:$0x33]  ;;  %v4361_v40 = vcombine.high %v564_v35, %v572_v36  ;;  %v580_v42 = vld [vmem:[#allocation2 + $0x118] sm:$0x33]  ;;  %v5457_v43 = vld [vmem:[%s5441_s23 + $0x8] sm:$0xff]  }
  0x97   : > { %v816_v29 = vsel %vm808_vm0, %v4372_v22, 0  ;;  %v4358_v41 = vcombine.low %v563_v32, %v571_v33  ;;  %v4375_v44 = vcombine.high %v579_v39, %v579_v39  ;;  %v557_v46 = vld [vmem:[#allocation2 + $0x60] sm:$0xff]  ;;  %v4360_v47 = vcombine.low %v564_v35, %v572_v36  ;;  %v550_v49 = vld [vmem:[#allocation2 + $0x28] sm:$0xff]  ;;  %v5470_v57 = vld [vmem:[%s5441_s23 + $0x10] ss:$0 sps:$4 sm:$0x33]  }
  0x98   : > { %860 = vmatpush1.bf16.msra.mxu0 %v4354_v17  ;;  %921 = vmatpush1.bf16.msra.mxu1 %v4356_v18  ;;  %v4374_v48 = vcombine.low %v579_v39, %v579_v39  ;;  %v558_v50 = vld [vmem:[#allocation2 + $0x68] sm:$0xff]  ;;  %v4377_v51 = vcombine.high %v580_v42, %v580_v42  ;;  %v4376_v52 = vcombine.low %v580_v42, %v580_v42  ;;  %v565_v58 = vld [vmem:[#allocation2 + $0xa0] sm:$0xff]  ;;  %v551_v7 = vld [vmem:[#allocation2 + $0x30] sm:$0xff] }
  0x99   : > { %4386 = vmatprep.subr.msk.bf16.mxu0 %vm808_vm0, %v4371_v19  ;;  %4390 = vmatprep.subr.msk.bf16.mxu1 %vm808_vm0, %v4373_v21  ;;  %v4347_v54 = vcombine.high %v549_v45, %v557_v46  ;;  %v4349_v56 = vcombine.high %v550_v49, %v558_v50  ;;  %v573_v59 = vld [vmem:[#allocation2 + $0xe0] sm:$0xff]  ;;  %v566_v60 = vld [vmem:[#allocation2 + $0xa8] sm:$0xff]  ;;  %v4346_v62 = vcombine.low %v549_v45, %v557_v46  ;;  %v559_v8 = vld [vmem:[#allocation2 + $0x70] sm:$0xff] }
  0x9a   : > { %v822_v53 = vsel %vm808_vm0, %v4374_v48, 0  ;;  %v828_v55 = vsel %vm808_vm0, %v4376_v52, 0  ;;  %v574_v61 = vld [vmem:[#allocation2 + $0xe8] sm:$0xff]  ;;  %v581_v63 = vld [vmem:[#allocation2 + $0x120] sm:$0x33]  ;;  %v4348_v1 = vcombine.low %v550_v49, %v558_v50  ;;  %v4363_v2 = vcombine.high %v565_v58, %v573_v59  ;;  %v552_v11 = vld [vmem:[#allocation2 + $0x38] sm:$0xff]  ;;  %s538_s14 = scalar_lea.vmem %s5742_s13, %s4334_s22 }
  0x9b   : > { %v582_v3 = vld [vmem:[#allocation2 + $0x128] sm:$0x33]  ;;  %v4365_v4 = vcombine.high %v566_v60, %v574_v61  ;;  %v4362_v5 = vcombine.low %v565_v58, %v573_v59  ;;  %v4379_v6 = vcombine.high %v581_v63, %v581_v63  ;;  %v4364_v9 = vcombine.low %v566_v60, %v574_v61  ;;  %v560_v12 = vld [vmem:[#allocation2 + $0x78] sm:$0xff]  ;;  %v567_v19 = vld [vmem:[#allocation2 + $0xb0] sm:$0xff] }
  0x9c   : > { %862 = vmatpush1.bf16.msra.mxu0 %v810_v27  ;;  %923 = vmatpush1.bf16.msra.mxu1 %v816_v29  ;;  %v4378_v10 = vcombine.low %v581_v63, %v581_v63  ;;  %v4381_v13 = vcombine.high %v582_v3, %v582_v3  ;;  %v4380_v14 = vcombine.low %v582_v3, %v582_v3  ;;  %v575_v20 = vld [vmem:[#allocation2 + $0xf0] sm:$0xff]  ;;  %v568_v21 = vld [vmem:[#allocation2 + $0xb8] sm:$0xff] }
  0x9d   : > { %979 = vmatprep.subr.bf16.mxu0 %v4343_v28  ;;  %1040 = vmatprep.subr.bf16.mxu1 %v4345_v30  ;;  %v4351_v16 = vcombine.high %v551_v7, %v559_v8  ;;  %v4353_v18 = vcombine.high %v552_v11, %v560_v12  ;;  %v576_v22 = vld [vmem:[#allocation2 + $0xf8] sm:$0xff]  ;;  %v4350_v23 = vcombine.low %v551_v7, %v559_v8  ;;  %v583_v24 = vld [vmem:[#allocation2 + $0x130] sm:$0x33] }
  0x9e   : > { %v834_v15 = vsel %vm808_vm0, %v4378_v10, 0  ;;  %v840_v17 = vsel %vm808_vm0, %v4380_v14, 0  ;;  %v4352_v25 = vcombine.low %v552_v11, %v560_v12  ;;  %v4367_v26 = vcombine.high %v567_v19, %v575_v20  ;;  %v584_v27 = vld [vmem:[#allocation2 + $0x138] sm:$0x33]  ;;  %v1393_v12 = vld [vmem:[%s5710_s2] sm:$0xf] }
  0x9f   : > { %4387 = vmatmul.mubr.msk.bf16.vlgmr.msra.gmra.mrb[0].mxu0 %vm798_vm1, %v5448_v31  ;;  %4391 = vmatmul.mubr.msk.bf16.vlgmr.msra.gmra.mrb[0].mxu1 %vm798_vm1, %v5448_v31  ;;  %v4369_v28 = vcombine.high %v568_v21, %v576_v22  ;;  %v4366_v29 = vcombine.low %v567_v19, %v575_v20  ;;  %v4383_v30 = vcombine.high %v583_v24, %v583_v24 }
  0xa0   : > { %980 = vmatpush1.bf16.msra.mxu0 %v4342_v34  ;;  %899 = vmatprep.mubr.bf16.mxu0 %v5200_v0  ;;  %v4368_v32 = vcombine.low %v568_v21, %v576_v22  ;;  %v4382_v33 = vcombine.low %v583_v24, %v583_v24  ;;  %v4385_v34 = vcombine.high %v584_v27, %v584_v27 }
  0xa1   : > { %960 = vmatprep.mubr.bf16.mxu1 %v5200_v0  ;;  %1041 = vmatpush1.bf16.msra.mxu1 %v4344_v37  ;;  %v4384_v35 = vcombine.low %v584_v27, %v584_v27 }
  0xa2   : > { %981 = vmatprep.subr.bf16.mxu0 %v4359_v38  ;;  %1042 = vmatprep.subr.bf16.mxu1 %v4361_v40  ;;  %v846_v36 = vsel %vm808_vm0, %v4382_v33, 0 }
  0xa3   : > { %v852_v37 = vsel %vm808_vm0, %v4384_v35, 0 }
  0xa4   : > { %982 = vmatpush1.bf16.msra.mxu0 %v4358_v41 }
  0xa5   : > { %4394 = vmatprep.subr.msk.bf16.mxu0 %vm808_vm0, %v4375_v44  ;;  %1043 = vmatpush1.bf16.msra.mxu1 %v4360_v47 }
  0xa6   : > { %4398 = vmatprep.subr.msk.bf16.mxu1 %vm808_vm0, %v4377_v51 }
  0xa7   : > { %4388 = vmatmul.mubr.msk.bf16.gmra.mrb[4].mxu0 %vm798_vm1, %v5457_v43  ;;  %4392 = vmatmul.mubr.msk.bf16.gmra.mrb[4].mxu1 %vm798_vm1, %v5457_v43 }
  0xa8   : > { %909 = vmatprep.mubr.bf16.mxu0 %v5200_v0  ;;  %970 = vmatprep.mubr.bf16.mxu1 %v5200_v0 }
  0xa9   : > { %984 = vmatpush1.bf16.msra.mxu0 %v822_v53  ;;  %1045 = vmatpush1.bf16.msra.mxu1 %v828_v55 }
  0xaa   : > { %1101 = vmatprep.subr.bf16.mxu0 %v4347_v54  ;;  %1162 = vmatprep.subr.bf16.mxu1 %v4349_v56 }
  0xaf   : > { %4389 = vmatmul.mubr.msk.bf16.gmra.mrb[8].mxu0 %vm798_vm1, %v5470_v57  ;;  %4393 = vmatmul.mubr.msk.bf16.gmra.mrb[8].mxu1 %vm798_vm1, %v5470_v57 }
  0xb0   : > { %1011 = vmatprep.mubr.bf16.mxu0 %v5200_v0  ;;  %1072 = vmatprep.mubr.bf16.mxu1 %v5200_v0 }
  0xb7   : > { %4395 = vmatmul.mubr.msk.bf16.vlgmr.msra.gmra.mrb[12].mxu0 %vm798_vm1, %v5448_v31  ;;  %4399 = vmatmul.mubr.msk.bf16.vlgmr.msra.gmra.mrb[12].mxu1 %vm798_vm1, %v5448_v31 }
  0xb8   : > { %1102 = vmatpush1.bf16.msra.mxu0 %v4346_v62  ;;  %1021 = vmatprep.mubr.bf16.mxu0 %v5200_v0 }
  0xb9   : > { %1082 = vmatprep.mubr.bf16.mxu1 %v5200_v0  ;;  %1163 = vmatpush1.bf16.msra.mxu1 %v4348_v1 }
  0xba   : > { %1103 = vmatprep.subr.bf16.mxu0 %v4363_v2  ;;  %1164 = vmatprep.subr.bf16.mxu1 %v4365_v4 }
  0xbc   : > { %1104 = vmatpush1.bf16.msra.mxu0 %v4362_v5 }
  0xbd   : > { %4402 = vmatprep.subr.msk.bf16.mxu0 %vm808_vm0, %v4379_v6  ;;  %1165 = vmatpush1.bf16.msra.mxu1 %v4364_v9 }
  0xbe   : > { %4406 = vmatprep.subr.msk.bf16.mxu1 %vm808_vm0, %v4381_v13  ;;  %v4418_v13 = vld [vmem:[%s5710_s2 + $0x4] sm:$0xf] }
  0xbf   : > { %4396 = vmatmul.mubr.msk.bf16.gmra.mrb[16].mxu0 %vm798_vm1, %v5457_v43  ;;  %4400 = vmatmul.mubr.msk.bf16.gmra.mrb[16].mxu1 %vm798_vm1, %v5457_v43 }
  0xc0   : > { %1031 = vmatprep.mubr.bf16.mxu0 %v5200_v0  ;;  %1092 = vmatprep.mubr.bf16.mxu1 %v5200_v0 }
  0xc1   : > { %1106 = vmatpush1.bf16.msra.mxu0 %v834_v15  ;;  %1167 = vmatpush1.bf16.msra.mxu1 %v840_v17 }
  0xc2   : > { %1223 = vmatprep.subr.bf16.mxu0 %v4351_v16  ;;  %1284 = vmatprep.subr.bf16.mxu1 %v4353_v18 }
  0xc7   : > { %4397 = vmatmul.mubr.msk.bf16.gmra.mrb[20].mxu0 %vm798_vm1, %v5470_v57  ;;  %4401 = vmatmul.mubr.msk.bf16.gmra.mrb[20].mxu1 %vm798_vm1, %v5470_v57 }
  0xc8   : > { %1133 = vmatprep.mubr.bf16.mxu0 %v5200_v0  ;;  %1194 = vmatprep.mubr.bf16.mxu1 %v5200_v0 }
  0xcf   : > { %4403 = vmatmul.mubr.msk.bf16.vlgmr.msra.gmra.mrb[24].mxu0 %vm798_vm1, %v5448_v31  ;;  %4407 = vmatmul.mubr.msk.bf16.vlgmr.msra.gmra.mrb[24].mxu1 %vm798_vm1, %v5448_v31 }
  0xd0   : > { %1224 = vmatpush1.bf16.msra.mxu0 %v4350_v23  ;;  %1143 = vmatprep.mubr.bf16.mxu0 %v5200_v0 }
  0xd1   : > { %1204 = vmatprep.mubr.bf16.mxu1 %v5200_v0  ;;  %1285 = vmatpush1.bf16.msra.mxu1 %v4352_v25 }
  0xd2   : > { %1225 = vmatprep.subr.bf16.mxu0 %v4367_v26  ;;  %1286 = vmatprep.subr.bf16.mxu1 %v4369_v28 }
  0xd4   : > { %1226 = vmatpush1.bf16.msra.mxu0 %v4366_v29 }
  0xd5   : > { %4410 = vmatprep.subr.msk.bf16.mxu0 %vm808_vm0, %v4383_v30  ;;  %1287 = vmatpush1.bf16.msra.mxu1 %v4368_v32 }
  0xd6   : > { %4414 = vmatprep.subr.msk.bf16.mxu1 %vm808_vm0, %v4385_v34 }
  0xd7   : > { %4404 = vmatmul.mubr.msk.bf16.gmra.mrb[28].mxu0 %vm798_vm1, %v5457_v43  ;;  %4408 = vmatmul.mubr.msk.bf16.gmra.mrb[28].mxu1 %vm798_vm1, %v5457_v43 }
  0xd8   : > { %1153 = vmatprep.mubr.bf16.mxu0 %v5200_v0  ;;  %1214 = vmatprep.mubr.bf16.mxu1 %v5200_v0 }
  0xd9   : > { %1228 = vmatpush1.bf16.msra.mxu0 %v846_v36  ;;  %1289 = vmatpush1.bf16.msra.mxu1 %v852_v37 }
  0xdf   : > { %4405 = vmatmul.mubr.msk.bf16.gmra.mrb[32].mxu0 %vm798_vm1, %v5470_v57  ;;  %4409 = vmatmul.mubr.msk.bf16.gmra.mrb[32].mxu1 %vm798_vm1, %v5470_v57 }
  0xe0   : > { %1255 = vmatprep.mubr.bf16.mxu0 %v5200_v0  ;;  %1316 = vmatprep.mubr.bf16.mxu1 %v5200_v0 }
  0xe7   : > { %4411 = vmatmul.mubr.msk.bf16.vlgmr.msra.gmra.mrb[36].mxu0 %vm798_vm1, %v5448_v31  ;;  %4415 = vmatmul.mubr.msk.bf16.vlgmr.msra.gmra.mrb[36].mxu1 %vm798_vm1, %v5448_v31 }
  0xe8   : > { %1265 = vmatprep.mubr.bf16.mxu0 %v5200_v0  ;;  %1326 = vmatprep.mubr.bf16.mxu1 %v5200_v0 }
  0xef   : > { %4412 = vmatmul.mubr.msk.bf16.gmra.mrb[40].mxu0 %vm798_vm1, %v5457_v43  ;;  %4416 = vmatmul.mubr.msk.bf16.gmra.mrb[40].mxu1 %vm798_vm1, %v5457_v43 }
  0xf0   : > { %1275 = vmatprep.mubr.bf16.mxu0 %v5200_v0  ;;  %1336 = vmatprep.mubr.bf16.mxu1 %v5200_v0 }
  0xf7   : > { %4413 = vmatmul.mubr.msk.bf16.gmra.mrb[44].mxu0 %vm798_vm1, %v5470_v57  ;;  %4417 = vmatmul.mubr.msk.bf16.gmra.mrb[44].mxu1 %vm798_vm1, %v5470_v57 }
  0xf8   : > { %1437 = vmatprep.mubr.bf16.mxu0 %v5200_v0  ;;  %1487 = vmatprep.mubr.bf16.mxu1 %v5200_v0 }
 0x172   : > { %v891_v31 = vpop.f32.mrb[0].mxu0  ;;  %v952_v38 = vpop.f32.mrb[0].mxu1 }
 0x173   : > { %v893_v39 = vpop.f32.mrb[1].mxu0  ;;  %v954_v40 = vpop.f32.mrb[1].mxu1 }
 0x174   : > { %v895_v41 = vpop.f32.mrb[2].mxu0  ;;  %v956_v43 = vpop.f32.mrb[2].mxu1 }
 0x175   : > { %v1345_v42 = vpack.c.bf16 %v895_v41, %v891_v31  ;;  %v897_v44 = vpop.f32.mrb[3].mxu0  ;;  %v1347_v45 = vpack.c.bf16 %v956_v43, %v952_v38  ;;  %v958_v47 = vpop.f32.mrb[3].mxu1 }
 0x176   : > { %v1346_v46 = vpack.c.bf16 %v897_v44, %v893_v39  ;;  %v1348_v48 = vpack.c.bf16 %v958_v47, %v954_v40 }
 0x178   : > { %1455 = vmatprep.subr.bf16.mxu1 %v1346_v46  ;;  %1405 = vmatprep.subr.bf16.mxu0 %v1348_v48 }
 0x179   : > { %1456 = vmatpush1.bf16.msra.mxu1 %v1345_v42  ;;  %1406 = vmatpush1.bf16.msra.mxu0 %v1347_v45 }
 0x17a   : > { %v901_v49 = vpop.f32.mrb[4].mxu0  ;;  %v962_v50 = vpop.f32.mrb[4].mxu1 }
 0x17b   : > { %v903_v51 = vpop.f32.mrb[5].mxu0  ;;  %v964_v52 = vpop.f32.mrb[5].mxu1 }
 0x17c   : > { %v905_v53 = vpop.f32.mrb[6].mxu0  ;;  %v966_v55 = vpop.f32.mrb[6].mxu1 }
 0x17d   : > { %v1361_v54 = vpack.c.bf16 %v905_v53, %v901_v49  ;;  %v907_v56 = vpop.f32.mrb[7].mxu0  ;;  %v1363_v57 = vpack.c.bf16 %v966_v55, %v962_v50  ;;  %v968_v59 = vpop.f32.mrb[7].mxu1  ;;  %v4426_v53 = vld [vmem:[%s5710_s2 + $0xc] sm:$0xf] }
 0x17e   : > { %v1362_v58 = vpack.c.bf16 %v907_v56, %v903_v51  ;;  %v1364_v60 = vpack.c.bf16 %v968_v59, %v964_v52  ;;  %v4423_v52 = vld [vmem:[%s5710_s2 + $0x8] sm:$0xf] }
 0x180   : > { %1457 = vmatprep.subr.bf16.mxu1 %v1362_v58  ;;  %1407 = vmatprep.subr.bf16.mxu0 %v1364_v60 }
 0x181   : > { %1458 = vmatpush1.bf16.msra.mxu1 %v1361_v54  ;;  %1408 = vmatpush1.bf16.msra.mxu0 %v1363_v57 }
 0x182   : > { %v911_v61 = vpop.f32.mrb[8].mxu0  ;;  %v972_v63 = vpop.f32.mrb[8].mxu1 }
 0x183   : > { %v1377_v62 = vpack.c.bf16 %v911_v61, %v911_v61  ;;  %v913_v1 = vpop.f32.mrb[9].mxu0  ;;  %v1379_v2 = vpack.c.bf16 %v972_v63, %v972_v63  ;;  %v974_v4 = vpop.f32.mrb[9].mxu1 }
 0x184   : > { %v1378_v3 = vpack.c.bf16 %v913_v1, %v913_v1  ;;  %v915_v5 = vpop.f32.mrb[10].mxu0  ;;  %v1380_v7 = vpack.c.bf16 %v974_v4, %v974_v4  ;;  %v976_v8 = vpop.f32.mrb[10].mxu1 }
 0x185   : > { %v1450_v6 = vsel %vm808_vm0, %v1377_v62, 0  ;;  %v916_v9 = vpop.f32.mrb[11].mxu0  ;;  %v1400_v10 = vsel %vm808_vm0, %v1379_v2, 0  ;;  %v977_v11 = vpop.f32.mrb[11].mxu1 }
 0x186   : > { %4421 = vmatprep.subr.msk.bf16.mxu1 %vm808_vm0, %v1378_v3  ;;  %4419 = vmatprep.subr.msk.bf16.mxu0 %vm808_vm0, %v1380_v7 }
 0x187   : > { %1460 = vmatpush1.bf16.msra.mxu1 %v1450_v6  ;;  %1410 = vmatpush1.bf16.msra.mxu0 %v1400_v10 }
 0x18a   : > { %v1013_v14 = vpop.f32.mrb[12].mxu0  ;;  %4422 = vmatmul.mubr.msk.bf16.vlgmr.msra.gmra.mrb[48].mxu1 %vm798_vm1, %v1393_v12  ;;  %v1074_v15 = vpop.f32.mrb[12].mxu1  ;;  %4420 = vmatmul.mubr.msk.bf16.vlgmr.msra.gmra.mrb[48].mxu0 %vm798_vm1, %v4418_v13 }
 0x18b   : > { %v1015_v16 = vpop.f32.mrb[13].mxu0  ;;  %1593 = vmatprep.mubr.bf16.mxu1 %v5200_v0  ;;  %v1076_v17 = vpop.f32.mrb[13].mxu1  ;;  %1539 = vmatprep.mubr.bf16.mxu0 %v5200_v0 }
 0x18c   : > { %v1017_v18 = vpop.f32.mrb[14].mxu0  ;;  %v1078_v20 = vpop.f32.mrb[14].mxu1 }
 0x18d   : > { %v1349_v19 = vpack.c.bf16 %v1017_v18, %v1013_v14  ;;  %v1019_v21 = vpop.f32.mrb[15].mxu0  ;;  %v1351_v22 = vpack.c.bf16 %v1078_v20, %v1074_v15  ;;  %v1080_v24 = vpop.f32.mrb[15].mxu1 }
 0x18e   : > { %v1350_v23 = vpack.c.bf16 %v1019_v21, %v1015_v16  ;;  %v1352_v25 = vpack.c.bf16 %v1080_v24, %v1076_v17 }
 0x190   : > { %1507 = vmatprep.subr.bf16.mxu0 %v1350_v23  ;;  %1561 = vmatprep.subr.bf16.mxu1 %v1352_v25 }
 0x191   : > { %1508 = vmatpush1.bf16.msra.mxu0 %v1349_v19  ;;  %1562 = vmatpush1.bf16.msra.mxu1 %v1351_v22 }
 0x192   : > { %v1023_v26 = vpop.f32.mrb[16].mxu0  ;;  %v1084_v27 = vpop.f32.mrb[16].mxu1 }
 0x193   : > { %v1025_v28 = vpop.f32.mrb[17].mxu0  ;;  %v1086_v29 = vpop.f32.mrb[17].mxu1 }
 0x194   : > { %v1027_v30 = vpop.f32.mrb[18].mxu0  ;;  %v1088_v33 = vpop.f32.mrb[18].mxu1 }
 0x195   : > { %v1365_v32 = vpack.c.bf16 %v1027_v30, %v1023_v26  ;;  %v1029_v34 = vpop.f32.mrb[19].mxu0  ;;  %v1367_v35 = vpack.c.bf16 %v1088_v33, %v1084_v27  ;;  %v1090_v37 = vpop.f32.mrb[19].mxu1  ;;  %v4432_v30 = vld [vmem:[%s5710_s2 + $0x14] sm:$0xf] }
 0x196   : > { %v1366_v36 = vpack.c.bf16 %v1029_v34, %v1025_v28  ;;  %v1368_v31 = vpack.c.bf16 %v1090_v37, %v1086_v29  ;;  %v4429_v29 = vld [vmem:[%s5710_s2 + $0x10] sm:$0xf] }
 0x198   : > { %1509 = vmatprep.subr.bf16.mxu0 %v1366_v36  ;;  %1563 = vmatprep.subr.bf16.mxu1 %v1368_v31 }
 0x199   : > { %1510 = vmatpush1.bf16.msra.mxu0 %v1365_v32  ;;  %1564 = vmatpush1.bf16.msra.mxu1 %v1367_v35 }
 0x19a   : > { %v1033_v38 = vpop.f32.mrb[20].mxu0  ;;  %v1094_v40 = vpop.f32.mrb[20].mxu1 }
 0x19b   : > { %v1381_v39 = vpack.c.bf16 %v1033_v38, %v1033_v38  ;;  %v1035_v41 = vpop.f32.mrb[21].mxu0  ;;  %v1383_v42 = vpack.c.bf16 %v1094_v40, %v1094_v40  ;;  %v1096_v44 = vpop.f32.mrb[21].mxu1 }
 0x19c   : > { %v1382_v43 = vpack.c.bf16 %v1035_v41, %v1035_v41  ;;  %v1037_v45 = vpop.f32.mrb[22].mxu0  ;;  %v1384_v47 = vpack.c.bf16 %v1096_v44, %v1096_v44  ;;  %v1098_v48 = vpop.f32.mrb[22].mxu1 }
 0x19d   : > { %v1502_v46 = vsel %vm808_vm0, %v1381_v39, 0  ;;  %v1038_v49 = vpop.f32.mrb[23].mxu0  ;;  %v1556_v50 = vsel %vm808_vm0, %v1383_v42, 0  ;;  %v1099_v51 = vpop.f32.mrb[23].mxu1 }
 0x19e   : > { %4424 = vmatprep.subr.msk.bf16.mxu0 %vm808_vm0, %v1382_v43  ;;  %4427 = vmatprep.subr.msk.bf16.mxu1 %vm808_vm0, %v1384_v47 }
 0x19f   : > { %1512 = vmatpush1.bf16.msra.mxu0 %v1502_v46  ;;  %1566 = vmatpush1.bf16.msra.mxu1 %v1556_v50 }
 0x1a2   : > { %v1135_v54 = vpop.f32.mrb[24].mxu0  ;;  %4425 = vmatmul.mubr.msk.bf16.vlgmr.msra.gmra.mrb[52].mxu0 %vm798_vm1, %v4423_v52  ;;  %v1196_v55 = vpop.f32.mrb[24].mxu1  ;;  %4428 = vmatmul.mubr.msk.bf16.vlgmr.msra.gmra.mrb[52].mxu1 %vm798_vm1, %v4426_v53 }
 0x1a3   : > { %v1137_v56 = vpop.f32.mrb[25].mxu0  ;;  %1647 = vmatprep.mubr.bf16.mxu0 %v5200_v0  ;;  %v1198_v57 = vpop.f32.mrb[25].mxu1  ;;  %1701 = vmatprep.mubr.bf16.mxu1 %v5200_v0 }
 0x1a4   : > { %v1139_v58 = vpop.f32.mrb[26].mxu0  ;;  %v1200_v60 = vpop.f32.mrb[26].mxu1 }
 0x1a5   : > { %v1353_v59 = vpack.c.bf16 %v1139_v58, %v1135_v54  ;;  %v1141_v61 = vpop.f32.mrb[27].mxu0  ;;  %v1355_v62 = vpack.c.bf16 %v1200_v60, %v1196_v55  ;;  %v1202_v1 = vpop.f32.mrb[27].mxu1  ;;  %v1838_v55 = vld [vmem:[#allocation4] sm:$0xff]  ;;  %v1839_v58 = vld [vmem:[#allocation4 + $0x8] sm:$0xff] }
 0x1a6   : > { %v1354_v63 = vpack.c.bf16 %v1141_v61, %v1137_v56  ;;  %v1356_v2 = vpack.c.bf16 %v1202_v1, %v1198_v57  ;;  %v1842_v56 = vld [vmem:[#allocation4 + $0x20] sm:$0xff] }
 0x1a8   : > { %1615 = vmatprep.subr.bf16.mxu0 %v1354_v63  ;;  %1669 = vmatprep.subr.bf16.mxu1 %v1356_v2 }
 0x1a9   : > { %1616 = vmatpush1.bf16.msra.mxu0 %v1353_v59  ;;  %1670 = vmatpush1.bf16.msra.mxu1 %v1355_v62  ;;  %v1843_v59 = vld [vmem:[#allocation4 + $0x28] sm:$0xff] }
 0x1aa   : > { %v1145_v3 = vpop.f32.mrb[28].mxu0  ;;  %v1206_v4 = vpop.f32.mrb[28].mxu1 }
 0x1ab   : > { %v1147_v5 = vpop.f32.mrb[29].mxu0  ;;  %v1208_v6 = vpop.f32.mrb[29].mxu1 }
 0x1ac   : > { %v1149_v7 = vpop.f32.mrb[30].mxu0  ;;  %v1210_v9 = vpop.f32.mrb[30].mxu1 }
 0x1ad   : > { %v1369_v8 = vpack.c.bf16 %v1149_v7, %v1145_v3  ;;  %v1151_v10 = vpop.f32.mrb[31].mxu0  ;;  %v1371_v11 = vpack.c.bf16 %v1210_v9, %v1206_v4  ;;  %v1212_v13 = vpop.f32.mrb[31].mxu1  ;;  %v4442_v4 = vcombine.high %v1838_v55, %v1842_v56  ;;  %v4444_v9 = vcombine.high %v1839_v58, %v1843_v59 }
 0x1ae   : > { %v1370_v12 = vpack.c.bf16 %v1151_v10, %v1147_v5  ;;  %v1372_v14 = vpack.c.bf16 %v1212_v13, %v1208_v6  ;;  %v1846_v10 = vld [vmem:[#allocation4 + $0x40] sm:$0xff] }
 0x1b0   : > { %1617 = vmatprep.subr.bf16.mxu0 %v1370_v12  ;;  %1671 = vmatprep.subr.bf16.mxu1 %v1372_v14  ;;  %v1847_v14 = vld [vmem:[#allocation4 + $0x48] sm:$0xff] }
 0x1b1   : > { %1618 = vmatpush1.bf16.msra.mxu0 %v1369_v8  ;;  %1672 = vmatpush1.bf16.msra.mxu1 %v1371_v11  ;;  %v1850_v11 = vld [vmem:[#allocation4 + $0x60] sm:$0xff] }
 0x1b2   : > { %v1155_v15 = vpop.f32.mrb[32].mxu0  ;;  %v1216_v17 = vpop.f32.mrb[32].mxu1 }
 0x1b3   : > { %v1385_v16 = vpack.c.bf16 %v1155_v15, %v1155_v15  ;;  %v1157_v18 = vpop.f32.mrb[33].mxu0  ;;  %v1387_v19 = vpack.c.bf16 %v1216_v17, %v1216_v17  ;;  %v1218_v21 = vpop.f32.mrb[33].mxu1  ;;  %v1851_v15 = vld [vmem:[#allocation4 + $0x68] sm:$0xff]  ;;  %v4441_v17 = vcombine.low %v1838_v55, %v1842_v56  ;;  %v1890_v55 = vld [vmem:[#allocation4 + $0x1a0] sm:$0xff] }
 0x1b4   : > { %v1386_v20 = vpack.c.bf16 %v1157_v18, %v1157_v18  ;;  %v1159_v22 = vpop.f32.mrb[34].mxu0  ;;  %v1388_v24 = vpack.c.bf16 %v1218_v21, %v1218_v21  ;;  %v1220_v25 = vpop.f32.mrb[34].mxu1  ;;  %v4438_v18 = vld [vmem:[%s5710_s2 + $0x1c] sm:$0xf]  ;;  %v4452_v21 = vcombine.high %v1847_v14, %v1851_v15 }
 0x1b5   : > { %v1610_v23 = vsel %vm808_vm0, %v1385_v16, 0  ;;  %v1160_v26 = vpop.f32.mrb[35].mxu0  ;;  %v1664_v27 = vsel %vm808_vm0, %v1387_v19, 0  ;;  %v1221_v28 = vpop.f32.mrb[35].mxu1  ;;  %v4435_v16 = vld [vmem:[%s5710_s2 + $0x18] sm:$0xf]  ;;  %v4443_v19 = vcombine.low %v1839_v58, %v1843_v59 }
 0x1b6   : > { %4430 = vmatprep.subr.msk.bf16.mxu0 %vm808_vm0, %v1386_v20  ;;  %4433 = vmatprep.subr.msk.bf16.mxu1 %vm808_vm0, %v1388_v24  ;;  %v4450_v20 = vcombine.high %v1846_v10, %v1850_v11  ;;  %v1854_v22 = vld [vmem:[#allocation4 + $0x80] sm:$0xff]  ;;  %v1855_v24 = vld [vmem:[#allocation4 + $0x88] sm:$0xff]  ;;  %v4449_v26 = vcombine.low %v1846_v10, %v1850_v11 }
 0x1b7   : > { %1620 = vmatpush1.bf16.msra.mxu0 %v1610_v23  ;;  %1674 = vmatpush1.bf16.msra.mxu1 %v1664_v27  ;;  %v1858_v23 = vld [vmem:[#allocation4 + $0xa0] sm:$0xff]  ;;  %v1859_v25 = vld [vmem:[#allocation4 + $0xa8] sm:$0xff]  ;;  %v4451_v27 = vcombine.low %v1847_v14, %v1851_v15 }
 0x1b8   : > { %v4458_v28 = vcombine.high %v1854_v22, %v1858_v23  ;;  %v1887_v59 = vld [vmem:[#allocation4 + $0x188] sm:$0xff]  ;;  %v1906_v10 = vld [vmem:[#allocation4 + $0x220] sm:$0xff] }
 0x1b9   : > { %v1903_v11 = vld [vmem:[#allocation4 + $0x208] sm:$0xff] }
 0x1ba   : > { %v1257_v32 = vpop.f32.mrb[36].mxu0  ;;  %4431 = vmatmul.mubr.msk.bf16.vlgmr.msra.gmra.mrb[56].mxu0 %vm798_vm1, %v4429_v29  ;;  %v1318_v33 = vpop.f32.mrb[36].mxu1  ;;  %4434 = vmatmul.mubr.msk.bf16.vlgmr.msra.gmra.mrb[56].mxu1 %vm798_vm1, %v4432_v30  ;;  %v4460_v29 = vcombine.high %v1855_v24, %v1859_v25  ;;  %v1862_v30 = vld [vmem:[#allocation4 + $0xc0] sm:$0xff] }
 0x1bb   : > { %v1259_v34 = vpop.f32.mrb[37].mxu0  ;;  %1755 = vmatprep.mubr.bf16.mxu0 %v5200_v0  ;;  %v1320_v35 = vpop.f32.mrb[37].mxu1  ;;  %1809 = vmatprep.mubr.bf16.mxu1 %v5200_v0 }
 0x1bc   : > { %v1261_v36 = vpop.f32.mrb[38].mxu0  ;;  %v1322_v31 = vpop.f32.mrb[38].mxu1 }
 0x1bd   : > { %v1357_v37 = vpack.c.bf16 %v1261_v36, %v1257_v32  ;;  %v1263_v38 = vpop.f32.mrb[39].mxu0  ;;  %v1359_v39 = vpack.c.bf16 %v1322_v31, %v1318_v33  ;;  %v1324_v41 = vpop.f32.mrb[39].mxu1  ;;  %v1866_v32 = vld [vmem:[#allocation4 + $0xe0] sm:$0xff]  ;;  %v1863_v33 = vld [vmem:[#allocation4 + $0xc8] sm:$0xff]  ;;  %v4459_v36 = vcombine.low %v1855_v24, %v1859_v25 }
 0x1be   : > { %v1358_v40 = vpack.c.bf16 %v1263_v38, %v1259_v34  ;;  %v1360_v42 = vpack.c.bf16 %v1324_v41, %v1320_v35  ;;  %v1867_v34 = vld [vmem:[#allocation4 + $0xe8] sm:$0xff]  ;;  %v4457_v35 = vcombine.low %v1854_v22, %v1858_v23  ;;  %v4465_v38 = vcombine.low %v1862_v30, %v1866_v32  ;;  %v1874_v41 = vld [vmem:[#allocation4 + $0x120] sm:$0xff] }
 0x1bf   : > { %v4468_v31 = vcombine.high %v1863_v33, %v1867_v34  ;;  %v1918_v22 = vld [vmem:[#allocation4 + $0x280] sm:$0xff] }
 0x1c0   : > { %1723 = vmatprep.subr.bf16.mxu0 %v1358_v40  ;;  %1777 = vmatprep.subr.bf16.mxu1 %v1360_v42  ;;  %v1870_v40 = vld [vmem:[#allocation4 + $0x100] sm:$0xff]  ;;  %v1871_v42 = vld [vmem:[#allocation4 + $0x108] sm:$0xff] }
 0x1c1   : > { %1724 = vmatpush1.bf16.msra.mxu0 %v1357_v37  ;;  %1778 = vmatpush1.bf16.msra.mxu1 %v1359_v39  ;;  %v4466_v37 = vcombine.high %v1862_v30, %v1866_v32  ;;  %v4467_v39 = vcombine.low %v1863_v33, %v1867_v34  ;;  %v1922_v23 = vld [vmem:[#allocation4 + $0x2a0] sm:$0xff]  ;;  %v1927_v34 = vld [vmem:[#allocation4 + $0x2c8] sm:$0xff] }
 0x1c2   : > { %v1267_v43 = vpop.f32.mrb[40].mxu0  ;;  %v1328_v44 = vpop.f32.mrb[40].mxu1  ;;  %v1926_v32 = vld [vmem:[#allocation4 + $0x2c0] sm:$0xff] }
 0x1c3   : > { %v1269_v45 = vpop.f32.mrb[41].mxu0  ;;  %v1330_v46 = vpop.f32.mrb[41].mxu1  ;;  %v1930_v33 = vld [vmem:[#allocation4 + $0x2e0] sm:$0xff] }
 0x1c4   : > { %v1271_v47 = vpop.f32.mrb[42].mxu0  ;;  %v1332_v49 = vpop.f32.mrb[42].mxu1 }
 0x1c5   : > { %v1373_v48 = vpack.c.bf16 %v1271_v47, %v1267_v43  ;;  %v1273_v50 = vpop.f32.mrb[43].mxu0  ;;  %v1375_v51 = vpack.c.bf16 %v1332_v49, %v1328_v44  ;;  %v1334_v53 = vpop.f32.mrb[43].mxu1  ;;  %v4473_v43 = vcombine.low %v1870_v40, %v1874_v41  ;;  %v4474_v44 = vcombine.high %v1870_v40, %v1874_v41  ;;  %v1882_v49 = vld [vmem:[#allocation4 + $0x160] sm:$0xff]  ;;  %v1935_v41 = vld [vmem:[#allocation4 + $0x308] sm:$0xff] }
 0x1c6   : > { %v1374_v52 = vpack.c.bf16 %v1273_v50, %v1269_v45  ;;  %v1376_v54 = vpack.c.bf16 %v1334_v53, %v1330_v46  ;;  %v1875_v45 = vld [vmem:[#allocation4 + $0x128] sm:$0xff]  ;;  %v1938_v40 = vld [vmem:[#allocation4 + $0x320] sm:$0xff] }
 0x1c7   : > { %v4475_v46 = vcombine.low %v1871_v42, %v1875_v45  ;;  %v4476_v47 = vcombine.high %v1871_v42, %v1875_v45  ;;  %v1879_v50 = vld [vmem:[#allocation4 + $0x148] sm:$0xff] }
 0x1c8   : > { %1725 = vmatprep.subr.bf16.mxu0 %v1374_v52  ;;  %1779 = vmatprep.subr.bf16.mxu1 %v1376_v54  ;;  %v1883_v53 = vld [vmem:[#allocation4 + $0x168] sm:$0xff]  ;;  %v1886_v54 = vld [vmem:[#allocation4 + $0x180] sm:$0xff] }
 0x1c9   : > { %1726 = vmatpush1.bf16.msra.mxu0 %v1373_v48  ;;  %1780 = vmatpush1.bf16.msra.mxu1 %v1375_v51  ;;  %v1878_v48 = vld [vmem:[#allocation4 + $0x140] sm:$0xff]  ;;  %v4483_v56 = vcombine.low %v1879_v50, %v1883_v53  ;;  %v4490_v58 = vcombine.high %v1886_v54, %v1890_v55  ;;  %v1939_v42 = vld [vmem:[#allocation4 + $0x328] sm:$0xff] }
 0x1ca   : > { %v1277_v57 = vpop.f32.mrb[44].mxu0  ;;  %v1338_v61 = vpop.f32.mrb[44].mxu1  ;;  %v4481_v51 = vcombine.low %v1878_v48, %v1882_v49  ;;  %v4482_v52 = vcombine.high %v1878_v48, %v1882_v49  ;;  %v4539_v48 = vcombine.low %v1935_v41, %v1939_v42  ;;  %v1942_v49 = vld [vmem:[#allocation4 + $0x340] sm:$0xff] }
 0x1cb   : > { %v1389_v60 = vpack.c.bf16 %v1277_v57, %v1277_v57  ;;  %v1279_v62 = vpop.f32.mrb[45].mxu0  ;;  %v1391_v63 = vpack.c.bf16 %v1338_v61, %v1338_v61  ;;  %v1340_v2 = vpop.f32.mrb[45].mxu1  ;;  %v4484_v57 = vcombine.high %v1879_v50, %v1883_v53  ;;  %v1946_v50 = vld [vmem:[#allocation4 + $0x360] sm:$0xff]  ;;  %v1947_v53 = vld [vmem:[#allocation4 + $0x368] sm:$0xff] }
 0x1cc   : > { %v1390_v1 = vpack.c.bf16 %v1279_v62, %v1279_v62  ;;  %v1281_v3 = vpop.f32.mrb[46].mxu0  ;;  %v1392_v6 = vpack.c.bf16 %v1340_v2, %v1340_v2  ;;  %v1342_v7 = vpop.f32.mrb[46].mxu1  ;;  %v4489_v62 = vcombine.low %v1886_v54, %v1890_v55  ;;  %v1898_v2 = vld [vmem:[#allocation4 + $0x1e0] sm:$0xff]  ;;  %v4545_v54 = vcombine.low %v1942_v49, %v1946_v50 }
 0x1cd   : > { %v1718_v5 = vsel %vm808_vm0, %v1389_v60, 0  ;;  %v1282_v8 = vpop.f32.mrb[47].mxu0  ;;  %v1772_v12 = vsel %vm808_vm0, %v1391_v63, 0  ;;  %v1343_v13 = vpop.f32.mrb[47].mxu1  ;;  %v1891_v60 = vld [vmem:[#allocation4 + $0x1a8] sm:$0xff] }
 0x1ce   : > { %4436 = vmatprep.subr.msk.bf16.mxu0 %vm808_vm0, %v1390_v1  ;;  %4439 = vmatprep.subr.msk.bf16.mxu1 %vm808_vm0, %v1392_v6  ;;  %v4492_v61 = vcombine.high %v1887_v59, %v1891_v60  ;;  %v4491_v63 = vcombine.low %v1887_v59, %v1891_v60  ;;  %v1894_v1 = vld [vmem:[#allocation4 + $0x1c0] sm:$0xff]  ;;  %v1895_v3 = vld [vmem:[#allocation4 + $0x1c8] sm:$0xff] }
 0x1cf   : > { %1728 = vmatpush1.bf16.msra.mxu0 %v1718_v5  ;;  %1782 = vmatpush1.bf16.msra.mxu1 %v1772_v12  ;;  %v1899_v5 = vld [vmem:[#allocation4 + $0x1e8] sm:$0xff]  ;;  %v4497_v6 = vcombine.low %v1894_v1, %v1898_v2 }
 0x1d0   : > { %2606 = vmatprep.subr.bf16.mxu0 %v4442_v4  ;;  %2647 = vmatprep.subr.bf16.mxu1 %v4444_v9  ;;  %v4498_v4 = vcombine.high %v1894_v1, %v1898_v2  ;;  %v4499_v7 = vcombine.low %v1895_v3, %v1899_v5  ;;  %v4500_v8 = vcombine.high %v1895_v3, %v1899_v5  ;;  %v1902_v9 = vld [vmem:[#allocation4 + $0x200] sm:$0xff]  ;;  %v1907_v13 = vld [vmem:[#allocation4 + $0x228] sm:$0xff] }
 0x1d1   : > { %v4506_v12 = vcombine.high %v1902_v9, %v1906_v10  ;;  %v4505_v14 = vcombine.low %v1902_v9, %v1906_v10  ;;  %v4507_v15 = vcombine.low %v1903_v11, %v1907_v13  ;;  %v1951_v59 = vld [vmem:[#allocation4 + $0x388] sm:$0xff]  ;;  %v1958_v2 = vld [vmem:[#allocation4 + $0x3c0] sm:$0xff]  ;;  %v5594_v10 = vld [vmem:[#allocation4 + $0x10] sm:$0xff] }
 0x1d2   : > { %4437 = vmatmul.mubr.msk.bf16.vlgmr.msra.gmra.mrb[60].mxu0 %vm798_vm1, %v4435_v16  ;;  %4440 = vmatmul.mubr.msk.bf16.vlgmr.msra.gmra.mrb[60].mxu1 %vm798_vm1, %v4438_v18  ;;  %v4508_v16 = vcombine.high %v1903_v11, %v1907_v13  ;;  %v1914_v18 = vld [vmem:[#allocation4 + $0x260] sm:$0xff]  ;;  %v5596_v11 = vld [vmem:[#allocation4 + $0x30] sm:$0xff] }
 0x1d3   : > { %2607 = vmatpush1.bf16.msra.mxu0 %v4441_v17  ;;  %2648 = vmatpush1.bf16.msra.mxu1 %v4443_v19  ;;  %v1910_v17 = vld [vmem:[#allocation4 + $0x240] sm:$0xff]  ;;  %v1911_v19 = vld [vmem:[#allocation4 + $0x248] sm:$0xff]  ;;  %v4446_v13 = vcombine.high %v5594_v10, %v5596_v11 }
 0x1d4   : > { %2608 = vmatprep.subr.bf16.mxu0 %v4450_v20  ;;  %2649 = vmatprep.subr.bf16.mxu1 %v4452_v21  ;;  %v4514_v20 = vcombine.high %v1910_v17, %v1914_v18  ;;  %v1915_v21 = vld [vmem:[#allocation4 + $0x268] sm:$0xff]  ;;  %v4513_v24 = vcombine.low %v1910_v17, %v1914_v18  ;;  %v1962_v3 = vld [vmem:[#allocation4 + $0x3e0] sm:$0xff] }
 0x1d5   : > { %v4516_v25 = vcombine.high %v1911_v19, %v1915_v21  ;;  %v4562_v5 = vcombine.high %v1958_v2, %v1962_v3 }
 0x1d7   : > { %2609 = vmatpush1.bf16.msra.mxu0 %v4449_v26  ;;  %2650 = vmatpush1.bf16.msra.mxu1 %v4451_v27  ;;  %v1919_v26 = vld [vmem:[#allocation4 + $0x288] sm:$0xff] }
 0x1d8   : > { %2610 = vmatprep.subr.bf16.mxu0 %v4458_v28  ;;  %2651 = vmatprep.subr.bf16.mxu1 %v4460_v29  ;;  %v1923_v27 = vld [vmem:[#allocation4 + $0x2a8] sm:$0xff]  ;;  %v4515_v28 = vcombine.low %v1911_v19, %v1915_v21  ;;  %v4522_v29 = vcombine.high %v1918_v22, %v1922_v23 }
 0x1d9   : > { %v4524_v30 = vcombine.high %v1919_v26, %v1923_v27 }
 0x1db   : > { %2611 = vmatpush1.bf16.msra.mxu0 %v4457_v35  ;;  %2652 = vmatpush1.bf16.msra.mxu1 %v4459_v36  ;;  %v1931_v35 = vld [vmem:[#allocation4 + $0x2e8] sm:$0xff]  ;;  %v4521_v36 = vcombine.low %v1918_v22, %v1922_v23 }
 0x1dc   : > { %2612 = vmatprep.subr.bf16.mxu0 %v4466_v37  ;;  %2653 = vmatprep.subr.bf16.mxu1 %v4468_v31  ;;  %v4523_v37 = vcombine.low %v1919_v26, %v1923_v27  ;;  %v4530_v31 = vcombine.high %v1926_v32, %v1930_v33 }
 0x1df   : > { %2613 = vmatpush1.bf16.msra.mxu0 %v4465_v38  ;;  %2654 = vmatpush1.bf16.msra.mxu1 %v4467_v39  ;;  %v4532_v38 = vcombine.high %v1927_v34, %v1931_v35  ;;  %v1934_v39 = vld [vmem:[#allocation4 + $0x300] sm:$0xff] }
 0x1e0   : > { %2614 = vmatprep.subr.bf16.mxu0 %v4474_v44  ;;  %2655 = vmatprep.subr.bf16.mxu1 %v4476_v47  ;;  %v4531_v44 = vcombine.low %v1927_v34, %v1931_v35  ;;  %v4538_v45 = vcombine.high %v1934_v39, %v1938_v40  ;;  %v4537_v47 = vcombine.low %v1934_v39, %v1938_v40 }
 0x1e3   : > { %2615 = vmatpush1.bf16.msra.mxu0 %v4473_v43  ;;  %2656 = vmatpush1.bf16.msra.mxu1 %v4475_v46  ;;  %v4529_v43 = vcombine.low %v1926_v32, %v1930_v33  ;;  %v4540_v46 = vcombine.high %v1935_v41, %v1939_v42 }
 0x1e4   : > { %2616 = vmatprep.subr.bf16.mxu0 %v4482_v52  ;;  %2657 = vmatprep.subr.bf16.mxu1 %v4484_v57  ;;  %v4546_v52 = vcombine.high %v1942_v49, %v1946_v50  ;;  %v1950_v57 = vld [vmem:[#allocation4 + $0x380] sm:$0xff] }
 0x1e7   : > { %2617 = vmatpush1.bf16.msra.mxu0 %v4481_v51  ;;  %2658 = vmatpush1.bf16.msra.mxu1 %v4483_v56  ;;  %v1943_v51 = vld [vmem:[#allocation4 + $0x348] sm:$0xff] }
 0x1e8   : > { %2618 = vmatprep.subr.bf16.mxu0 %v4490_v58  ;;  %2659 = vmatprep.subr.bf16.mxu1 %v4492_v61  ;;  %v4547_v55 = vcombine.low %v1943_v51, %v1947_v53  ;;  %v4548_v56 = vcombine.high %v1943_v51, %v1947_v53  ;;  %v1954_v58 = vld [vmem:[#allocation4 + $0x3a0] sm:$0xff]  ;;  %v1955_v61 = vld [vmem:[#allocation4 + $0x3a8] sm:$0xff] }
 0x1e9   : > { %v4554_v60 = vcombine.high %v1950_v57, %v1954_v58  ;;  %v4556_v1 = vcombine.high %v1951_v59, %v1955_v61 }
 0x1eb   : > { %2619 = vmatpush1.bf16.msra.mxu0 %v4489_v62  ;;  %2660 = vmatpush1.bf16.msra.mxu1 %v4491_v63  ;;  %v4553_v62 = vcombine.low %v1950_v57, %v1954_v58  ;;  %v4555_v63 = vcombine.low %v1951_v59, %v1955_v61 }
 0x1ec   : > { %2620 = vmatprep.subr.bf16.mxu0 %v4498_v4  ;;  %2661 = vmatprep.subr.bf16.mxu1 %v4500_v8  ;;  %v1959_v4 = vld [vmem:[#allocation4 + $0x3c8] sm:$0xff] }
 0x1ef   : > { %2621 = vmatpush1.bf16.msra.mxu0 %v4497_v6  ;;  %2662 = vmatpush1.bf16.msra.mxu1 %v4499_v7  ;;  %v1963_v6 = vld [vmem:[#allocation4 + $0x3e8] sm:$0xff]  ;;  %v4561_v7 = vcombine.low %v1958_v2, %v1962_v3 }
 0x1f0   : > { %2622 = vmatprep.subr.bf16.mxu0 %v4506_v12  ;;  %2663 = vmatprep.subr.bf16.mxu1 %v4508_v16  ;;  %v4563_v8 = vcombine.low %v1959_v4, %v1963_v6  ;;  %v4564_v9 = vcombine.high %v1959_v4, %v1963_v6  ;;  %v5598_v12 = vld [vmem:[#allocation4 + $0x18] sm:$0xff] }
 0x1f3   : > { %2623 = vmatpush1.bf16.msra.mxu0 %v4505_v14  ;;  %2664 = vmatpush1.bf16.msra.mxu1 %v4507_v15  ;;  %v5602_v14 = vld [vmem:[#allocation4 + $0x38] sm:$0xff]  ;;  %v4445_v15 = vcombine.low %v5594_v10, %v5596_v11 }
 0x1f4   : > { %2624 = vmatprep.subr.bf16.mxu0 %v4514_v20  ;;  %2665 = vmatprep.subr.bf16.mxu1 %v4516_v25  ;;  %v4447_v16 = vcombine.low %v5598_v12, %v5602_v14  ;;  %v4448_v17 = vcombine.high %v5598_v12, %v5602_v14 }
 0x1f7   : > { %2625 = vmatpush1.bf16.msra.mxu0 %v4513_v24  ;;  %2666 = vmatpush1.bf16.msra.mxu1 %v4515_v28 }
 0x1f8   : > { %2626 = vmatprep.subr.bf16.mxu0 %v4522_v29  ;;  %2667 = vmatprep.subr.bf16.mxu1 %v4524_v30 }
 0x1fb   : > { %2627 = vmatpush1.bf16.msra.mxu0 %v4521_v36  ;;  %2668 = vmatpush1.bf16.msra.mxu1 %v4523_v37 }
 0x1fc   : > { %2628 = vmatprep.subr.bf16.mxu0 %v4530_v31  ;;  %2669 = vmatprep.subr.bf16.mxu1 %v4532_v38 }
 0x1ff   : > { %2629 = vmatpush1.bf16.msra.mxu0 %v4529_v43  ;;  %2670 = vmatpush1.bf16.msra.mxu1 %v4531_v44 }
 0x200   : > { %2630 = vmatprep.subr.bf16.mxu0 %v4538_v45  ;;  %2671 = vmatprep.subr.bf16.mxu1 %v4540_v46 }
 0x203   : > { %2631 = vmatpush1.bf16.msra.mxu0 %v4537_v47  ;;  %2672 = vmatpush1.bf16.msra.mxu1 %v4539_v48 }
 0x204   : > { %2632 = vmatprep.subr.bf16.mxu0 %v4546_v52  ;;  %2673 = vmatprep.subr.bf16.mxu1 %v4548_v56  ;;  %v1822_v52 = vlaneseq }
 0x206   : > { %v5610_v53 = vshrl.u32 %v1822_v52, 7  ;;  %v1888_v52 = vld [vmem:[#allocation4 + $0x190] sm:$0xff] }
 0x207   : > { %2633 = vmatpush1.bf16.msra.mxu0 %v4545_v54  ;;  %2674 = vmatpush1.bf16.msra.mxu1 %v4547_v55  ;;  %v1820_v55 = vld [vmem:[%s5711_s3] sm:$0x3] }
 0x208   : > { %2634 = vmatprep.subr.bf16.mxu0 %v4554_v60  ;;  %2675 = vmatprep.subr.bf16.mxu1 %v4556_v1  ;;  %v5613_v54 = vsub.s32 0, %v5610_v53  ;;  %v5619_v56 = vsub.s32 1, %v5610_v53 }
 0x20a   : > { %v1825_v60 = vrot.slane %v1820_v55, %v5613_v54  ;;  %v1829_v1 = vrot.slane %v1820_v55, %v5619_v56  ;;  %v1892_v55 = vld [vmem:[#allocation4 + $0x1b0] sm:$0xff] }
 0x20b   : > { %2635 = vmatpush1.bf16.msra.mxu0 %v4553_v62  ;;  %2676 = vmatpush1.bf16.msra.mxu1 %v4555_v63 }
 0x20c   : > { %2636 = vmatprep.subr.bf16.mxu0 %v4562_v5  ;;  %2677 = vmatprep.subr.bf16.mxu1 %v4564_v9 }
 0x20f   : > { %2637 = vmatpush1.bf16.msra.mxu0 %v4561_v7  ;;  %2678 = vmatpush1.bf16.msra.mxu1 %v4563_v8 }
 0x210   : > { %2688 = vmatprep.subr.bf16.mxu0 %v4446_v13  ;;  %2729 = vmatprep.subr.bf16.mxu1 %v4448_v17 }
 0x25d   : > { %v1489_v18 = vpop.f32.mrb[48].mxu1  ;;  %v1439_v19 = vpop.f32.mrb[48].mxu0 }
 0x25e   : > { %v1491_v20 = vpop.f32.mrb[49].mxu1  ;;  %v1441_v21 = vpop.f32.mrb[49].mxu0  ;;  %v1490_v22 = vadd.f32 %v1489_v18, %v1439_v19  ;;  %v1848_v18 = vld [vmem:[#allocation4 + $0x50] sm:$0xff] }
 0x25f   : > { %v1493_v23 = vpop.f32.mrb[50].mxu1  ;;  %v1443_v24 = vpop.f32.mrb[50].mxu0  ;;  %v1492_v25 = vadd.f32 %v1491_v20, %v1441_v21  ;;  %v1852_v19 = vld [vmem:[#allocation4 + $0x70] sm:$0xff]  ;;  %v1849_v20 = vld [vmem:[#allocation4 + $0x58] sm:$0xff] }
 0x260   : > { %v1494_v26 = vpop.f32.mrb[51].mxu1  ;;  %v1444_v27 = vpop.f32.mrb[51].mxu0  ;;  %v1853_v21 = vld [vmem:[#allocation4 + $0x78] sm:$0xff]  ;;  %v1856_v24 = vld [vmem:[#allocation4 + $0x90] sm:$0xff] }
 0x261   : > { %v4456_v26 = vcombine.high %v1849_v20, %v1853_v21  ;;  %v1860_v27 = vld [vmem:[#allocation4 + $0xb0] sm:$0xff] }
 0x262   : > { %v4461_v10 = vcombine.low %v1856_v24, %v1860_v27 }
 0x275   : > { %v1541_v28 = vpop.f32.mrb[52].mxu0  ;;  %v1595_v32 = vpop.f32.mrb[52].mxu1 }
 0x276   : > { %v1548_v29 = vadd.f32 %v1541_v28, %v1490_v22  ;;  %v1543_v30 = vpop.f32.mrb[53].mxu0  ;;  %v1597_v34 = vpop.f32.mrb[53].mxu1  ;;  %v1857_v28 = vld [vmem:[#allocation4 + $0x98] sm:$0xff] }
 0x277   : > { %v1549_v33 = vadd.f32 %v1543_v30, %v1492_v25  ;;  %v1545_v35 = vpop.f32.mrb[54].mxu0  ;;  %v1599_v31 = vpop.f32.mrb[54].mxu1  ;;  %v4454_v25 = vcombine.high %v1848_v18, %v1852_v19  ;;  %v4453_v30 = vcombine.low %v1848_v18, %v1852_v19 }
 0x278   : > { %v1602_v36 = vadd.f32 %v1595_v32, %v1548_v29  ;;  %v1546_v37 = vpop.f32.mrb[55].mxu0  ;;  %v1600_v39 = vpop.f32.mrb[55].mxu1  ;;  %v1861_v29 = vld [vmem:[#allocation4 + $0xb8] sm:$0xff]  ;;  %v4455_v32 = vcombine.low %v1849_v20, %v1853_v21  ;;  %v1864_v35 = vld [vmem:[#allocation4 + $0xd0] sm:$0xff] }
 0x279   : > { %v1603_v38 = vadd.f32 %v1597_v34, %v1549_v33  ;;  %v4462_v33 = vcombine.high %v1856_v24, %v1860_v27  ;;  %v4464_v34 = vcombine.high %v1857_v28, %v1861_v29  ;;  %v1865_v37 = vld [vmem:[#allocation4 + $0xd8] sm:$0xff]  ;;  %v4463_v11 = vcombine.low %v1857_v28, %v1861_v29  ;;  %v1916_v24 = vld [vmem:[#allocation4 + $0x270] sm:$0xff] }
 0x27a   : > { %v1869_v31 = vld [vmem:[#allocation4 + $0xf8] sm:$0xff] }
 0x27b   : > { %v4472_v14 = vcombine.high %v1865_v37, %v1869_v31  ;;  %v1877_v39 = vld [vmem:[#allocation4 + $0x138] sm:$0xff] }
 0x28d   : > { %v1649_v40 = vpop.f32.mrb[56].mxu0  ;;  %v1703_v43 = vpop.f32.mrb[56].mxu1 }
 0x28e   : > { %v1656_v41 = vadd.f32 %v1649_v40, %v1602_v36  ;;  %v1651_v42 = vpop.f32.mrb[57].mxu0  ;;  %v1705_v45 = vpop.f32.mrb[57].mxu1  ;;  %v1868_v36 = vld [vmem:[#allocation4 + $0xf0] sm:$0xff] }
 0x28f   : > { %v1657_v44 = vadd.f32 %v1651_v42, %v1603_v38  ;;  %v1653_v46 = vpop.f32.mrb[58].mxu0  ;;  %v1707_v49 = vpop.f32.mrb[58].mxu1  ;;  %v4470_v12 = vcombine.high %v1864_v35, %v1868_v36  ;;  %v1873_v38 = vld [vmem:[#allocation4 + $0x118] sm:$0xff]  ;;  %v4469_v40 = vcombine.low %v1864_v35, %v1868_v36 }
 0x290   : > { %v1710_v47 = vadd.f32 %v1703_v43, %v1656_v41  ;;  %v1654_v48 = vpop.f32.mrb[59].mxu0  ;;  %v1708_v51 = vpop.f32.mrb[59].mxu1  ;;  %v4471_v41 = vcombine.low %v1865_v37, %v1869_v31  ;;  %v4480_v43 = vcombine.high %v1873_v38, %v1877_v39  ;;  %v1881_v46 = vld [vmem:[#allocation4 + $0x158] sm:$0xff]  ;;  %v4479_v49 = vcombine.low %v1873_v38, %v1877_v39 }
 0x291   : > { %v1711_v50 = vadd.f32 %v1705_v45, %v1657_v44  ;;  %v1880_v44 = vld [vmem:[#allocation4 + $0x150] sm:$0xff]  ;;  %v1925_v35 = vld [vmem:[#allocation4 + $0x2b8] sm:$0xff] }
 0x292   : > { %v1884_v45 = vld [vmem:[#allocation4 + $0x170] sm:$0xff] }
 0x2a5   : > { %v1757_v57 = vpop.f32.mrb[60].mxu0  ;;  %v1811_v59 = vpop.f32.mrb[60].mxu1 }
 0x2a6   : > { %v1764_v58 = vadd.f32 %v1757_v57, %v1710_v47  ;;  %v1759_v61 = vpop.f32.mrb[61].mxu0  ;;  %v1813_v63 = vpop.f32.mrb[61].mxu1  ;;  %v1885_v47 = vld [vmem:[#allocation4 + $0x178] sm:$0xff] }
 0x2a7   : > { %v1765_v62 = vadd.f32 %v1759_v61, %v1711_v50  ;;  %v1761_v2 = vpop.f32.mrb[62].mxu0  ;;  %v1815_v4 = vpop.f32.mrb[62].mxu1  ;;  %v4486_v50 = vcombine.high %v1880_v44, %v1884_v45  ;;  %v4488_v51 = vcombine.high %v1881_v46, %v1885_v47  ;;  %v1889_v57 = vld [vmem:[#allocation4 + $0x198] sm:$0xff]  ;;  %v4494_v61 = vcombine.high %v1888_v52, %v1892_v55 }
 0x2a8   : > { %v1818_v3 = vadd.f32 %v1811_v59, %v1764_v58  ;;  %v1762_v5 = vpop.f32.mrb[63].mxu0  ;;  %v1816_v7 = vpop.f32.mrb[63].mxu1  ;;  %v1893_v58 = vld [vmem:[#allocation4 + $0x1b8] sm:$0xff]  ;;  %v4485_v59 = vcombine.low %v1880_v44, %v1884_v45  ;;  %v4493_v4 = vcombine.low %v1888_v52, %v1892_v55 }
 0x2a9   : > { %v1819_v6 = vadd.f32 %v1813_v63, %v1765_v62  ;;  %v4496_v62 = vcombine.high %v1889_v57, %v1893_v58  ;;  %v1896_v63 = vld [vmem:[#allocation4 + $0x1d0] sm:$0xff]  ;;  %v1897_v2 = vld [vmem:[#allocation4 + $0x1d8] sm:$0xff]  ;;  %v4495_v5 = vcombine.low %v1889_v57, %v1893_v58 }
 0x2aa   : > { %v1832_v8 = vadd.f32 %v1825_v60, %v1818_v3  ;;  %v4487_v60 = vcombine.low %v1881_v46, %v1885_v47  ;;  %v1901_v3 = vld [vmem:[#allocation4 + $0x1f8] sm:$0xff] }
 0x2ab   : > { %v1833_v9 = vadd.f32 %v1829_v1, %v1819_v6  ;;  %v1900_v1 = vld [vmem:[#allocation4 + $0x1f0] sm:$0xff]  ;;  %v4504_v7 = vcombine.high %v1897_v2, %v1901_v3  ;;  %v4503_v19 = vcombine.low %v1897_v2, %v1901_v3  ;;  %v1941_v44 = vld [vmem:[#allocation4 + $0x338] sm:$0xff] }
 0x2ac   : > { %v1834_v13 = vmax.f32 %v1832_v8, 0.0  ;;  %v4502_v6 = vcombine.high %v1896_v63, %v1900_v1  ;;  %v1904_v8 = vld [vmem:[#allocation4 + $0x210] sm:$0xff]  ;;  %v4501_v18 = vcombine.low %v1896_v63, %v1900_v1  ;;  %v1949_v52 = vld [vmem:[#allocation4 + $0x378] sm:$0xff] }
 0x2ad   : > { %v1835_v17 = vmax.f32 %v1833_v9, 0.0  ;;  %v1908_v9 = vld [vmem:[#allocation4 + $0x230] sm:$0xff]  ;;  %v1957_v63 = vld [vmem:[#allocation4 + $0x3b8] sm:$0xff] }
 0x2ae   : > { %v5623_v23 = vpack.c.bf16 %v1834_v13, %v1834_v13  ;;  %v1905_v13 = vld [vmem:[#allocation4 + $0x218] sm:$0xff]  ;;  %v4510_v20 = vcombine.high %v1904_v8, %v1908_v9  ;;  %v4509_v27 = vcombine.low %v1904_v8, %v1908_v9 }
 0x2af   : > { %v1837_v22 = vpack.c.bf16 %v1835_v17, %v1835_v17  ;;  %v1909_v17 = vld [vmem:[#allocation4 + $0x238] sm:$0xff] }
 0x2b0   : > { %v4512_v21 = vcombine.high %v1905_v13, %v1909_v17  ;;  %v4511_v28 = vcombine.low %v1905_v13, %v1909_v17  ;;  %v1965_v8 = vld [vmem:[#allocation4 + $0x3f8] sm:$0xff] }
 0x2b1   : > { %2638 = vmatprep.mubr.bf16.mxu0 %v1837_v22  ;;  %2679 = vmatprep.mubr.bf16.mxu1 %v1837_v22 }
 0x2b2   : > { %2639 = vmatmul.mubr.bf16.vlgmr.msra.gmra.mrb[64].mxu0 %v5623_v23  ;;  %2680 = vmatmul.mubr.bf16.vlgmr.msra.gmra.mrb[64].mxu1 %v5623_v23 }
 0x2b3   : > { %2689 = vmatpush1.bf16.msra.mxu0 %v4445_v15  ;;  %2730 = vmatpush1.bf16.msra.mxu1 %v4447_v16  ;;  %v1872_v15 = vld [vmem:[#allocation4 + $0x110] sm:$0xff] }
 0x2b4   : > { %2720 = vmatprep.mubr.bf16.mxu0 %v1837_v22  ;;  %2761 = vmatprep.mubr.bf16.mxu1 %v1837_v22  ;;  %v1876_v16 = vld [vmem:[#allocation4 + $0x130] sm:$0xff] }
 0x2b5   : > { %2690 = vmatprep.subr.bf16.mxu0 %v4454_v25  ;;  %2731 = vmatprep.subr.bf16.mxu1 %v4456_v26  ;;  %v4478_v42 = vcombine.high %v1872_v15, %v1876_v16  ;;  %v4477_v48 = vcombine.low %v1872_v15, %v1876_v16  ;;  %v1912_v22 = vld [vmem:[#allocation4 + $0x250] sm:$0xff]  ;;  %v1913_v25 = vld [vmem:[#allocation4 + $0x258] sm:$0xff] }
 0x2b6   : > { %v1917_v26 = vld [vmem:[#allocation4 + $0x278] sm:$0xff]  ;;  %v4518_v29 = vcombine.high %v1912_v22, %v1916_v24  ;;  %v4517_v36 = vcombine.low %v1912_v22, %v1916_v24 }
 0x2b7   : > { %2691 = vmatpush1.bf16.msra.mxu0 %v4453_v30  ;;  %2732 = vmatpush1.bf16.msra.mxu1 %v4455_v32  ;;  %v4520_v30 = vcombine.high %v1913_v25, %v1917_v26  ;;  %v1920_v32 = vld [vmem:[#allocation4 + $0x290] sm:$0xff]  ;;  %v4519_v37 = vcombine.low %v1913_v25, %v1917_v26  ;;  %v1933_v15 = vld [vmem:[#allocation4 + $0x2f8] sm:$0xff] }
 0x2b8   : > { %2692 = vmatprep.subr.bf16.mxu0 %v4462_v33  ;;  %2733 = vmatprep.subr.bf16.mxu1 %v4464_v34  ;;  %v1924_v33 = vld [vmem:[#allocation4 + $0x2b0] sm:$0xff]  ;;  %v1921_v34 = vld [vmem:[#allocation4 + $0x298] sm:$0xff] }
 0x2b9   : > { %v4526_v31 = vcombine.high %v1920_v32, %v1924_v33  ;;  %v4525_v16 = vcombine.low %v1920_v32, %v1924_v33  ;;  %v4527_v38 = vcombine.low %v1921_v34, %v1925_v35 }
 0x2bb   : > { %2693 = vmatpush1.bf16.msra.mxu0 %v4461_v10  ;;  %2734 = vmatpush1.bf16.msra.mxu1 %v4463_v11  ;;  %v4528_v10 = vcombine.high %v1921_v34, %v1925_v35  ;;  %v1928_v11 = vld [vmem:[#allocation4 + $0x2d0] sm:$0xff] }
 0x2bc   : > { %2694 = vmatprep.subr.bf16.mxu0 %v4470_v12  ;;  %2735 = vmatprep.subr.bf16.mxu1 %v4472_v14  ;;  %v1932_v12 = vld [vmem:[#allocation4 + $0x2f0] sm:$0xff]  ;;  %v1929_v14 = vld [vmem:[#allocation4 + $0x2d8] sm:$0xff] }
 0x2bd   : > { %v4534_v39 = vcombine.high %v1928_v11, %v1932_v12  ;;  %v4533_v45 = vcombine.low %v1928_v11, %v1932_v12  ;;  %v4535_v46 = vcombine.low %v1929_v14, %v1933_v15 }
 0x2bf   : > { %2695 = vmatpush1.bf16.msra.mxu0 %v4469_v40  ;;  %2736 = vmatpush1.bf16.msra.mxu1 %v4471_v41  ;;  %v4536_v40 = vcombine.high %v1929_v14, %v1933_v15  ;;  %v1936_v41 = vld [vmem:[#allocation4 + $0x310] sm:$0xff] }
 0x2c0   : > { %2696 = vmatprep.subr.bf16.mxu0 %v4478_v42  ;;  %2737 = vmatprep.subr.bf16.mxu1 %v4480_v43  ;;  %v1940_v42 = vld [vmem:[#allocation4 + $0x330] sm:$0xff]  ;;  %v1937_v43 = vld [vmem:[#allocation4 + $0x318] sm:$0xff] }
 0x2c1   : > { %v4542_v47 = vcombine.high %v1936_v41, %v1940_v42  ;;  %v4541_v55 = vcombine.low %v1936_v41, %v1940_v42  ;;  %v4543_v57 = vcombine.low %v1937_v43, %v1941_v44  ;;  %v4884_v41 = vld [vmem:[#allocation6 + $0x4] ss:$12 sps:$4 sm:$0xff]   ;;  %v4909_v42 = vld [vmem:[#allocation6 + $0xc8] ss:$12 sps:$4 sm:$0xff]  }
 0x2c3   : > { %2697 = vmatpush1.bf16.msra.mxu0 %v4477_v48  ;;  %2738 = vmatpush1.bf16.msra.mxu1 %v4479_v49  ;;  %v4544_v48 = vcombine.high %v1937_v43, %v1941_v44  ;;  %v1944_v49 = vld [vmem:[#allocation4 + $0x350] sm:$0xff] }
 0x2c4   : > { %2698 = vmatprep.subr.bf16.mxu0 %v4486_v50  ;;  %2739 = vmatprep.subr.bf16.mxu1 %v4488_v51  ;;  %v1948_v50 = vld [vmem:[#allocation4 + $0x370] sm:$0xff]  ;;  %v1945_v51 = vld [vmem:[#allocation4 + $0x358] sm:$0xff] }
 0x2c5   : > { %v4550_v58 = vcombine.high %v1944_v49, %v1948_v50  ;;  %v4549_v1 = vcombine.low %v1944_v49, %v1948_v50  ;;  %v4551_v2 = vcombine.low %v1945_v51, %v1949_v52  ;;  %v4882_v49 = vld [vmem:[#allocation6] ss:$12 sps:$4 sm:$0xff]   ;;  %v4910_v50 = vld [vmem:[#allocation6 + $0x8] ss:$12 sps:$4 sm:$0xff]  }
 0x2c7   : > { %2699 = vmatpush1.bf16.msra.mxu0 %v4485_v59  ;;  %2740 = vmatpush1.bf16.msra.mxu1 %v4487_v60  ;;  %v4552_v59 = vcombine.high %v1945_v51, %v1949_v52  ;;  %v1952_v60 = vld [vmem:[#allocation4 + $0x390] sm:$0xff]  ;;  %v4887_v51 = vld [vmem:[#allocation6 + $0x1c] ss:$12 sps:$4 sm:$0xff]   ;;  %v4914_v52 = vld [vmem:[#allocation6 + $0xe0] ss:$12 sps:$4 sm:$0xff]  }
 0x2c8   : > { %2700 = vmatprep.subr.bf16.mxu0 %v4494_v61  ;;  %2741 = vmatprep.subr.bf16.mxu1 %v4496_v62  ;;  %v1956_v61 = vld [vmem:[#allocation4 + $0x3b0] sm:$0xff]  ;;  %v1953_v62 = vld [vmem:[#allocation4 + $0x398] sm:$0xff] }
 0x2c9   : > { %v4558_v3 = vcombine.high %v1952_v60, %v1956_v61  ;;  %v4557_v9 = vcombine.low %v1952_v60, %v1956_v61  ;;  %v4559_v13 = vcombine.low %v1953_v62, %v1957_v63  ;;  %v4893_v60 = vld [vmem:[#allocation6 + $0x4c] ss:$12 sps:$4 sm:$0xff]   ;;  %v4891_v61 = vld [vmem:[#allocation6 + $0x48] ss:$12 sps:$4 sm:$0xff]  }
 0x2cb   : > { %2701 = vmatpush1.bf16.msra.mxu0 %v4493_v4  ;;  %2742 = vmatpush1.bf16.msra.mxu1 %v4495_v5  ;;  %v4560_v4 = vcombine.high %v1953_v62, %v1957_v63  ;;  %v1960_v5 = vld [vmem:[#allocation4 + $0x3d0] sm:$0xff]  ;;  %v4894_v63 = vld [vmem:[#allocation6 + $0x60] ss:$12 sps:$4 sm:$0xff]  }
 0x2cc   : > { %2702 = vmatprep.subr.bf16.mxu0 %v4502_v6  ;;  %2743 = vmatprep.subr.bf16.mxu1 %v4504_v7  ;;  %v1964_v6 = vld [vmem:[#allocation4 + $0x3f0] sm:$0xff]  ;;  %v1961_v7 = vld [vmem:[#allocation4 + $0x3d8] sm:$0xff] }
 0x2cd   : > { %v4566_v17 = vcombine.high %v1960_v5, %v1964_v6  ;;  %v4896_v62 = vld [vmem:[#allocation6 + $0x64] ss:$12 sps:$4 sm:$0xff]  }
 0x2cf   : > { %2703 = vmatpush1.bf16.msra.mxu0 %v4501_v18  ;;  %2744 = vmatpush1.bf16.msra.mxu1 %v4503_v19  ;;  %v4568_v18 = vcombine.high %v1961_v7, %v1965_v8  ;;  %v4565_v19 = vcombine.low %v1960_v5, %v1964_v6  ;;  %v4920_v5 = vld [vmem:[#allocation6 + $0x38] ss:$12 sps:$4 sm:$0xff]   ;;  %v4900_v6 = vld [vmem:[#allocation6 + $0x90] ss:$12 sps:$4 sm:$0xff]  }
 0x2d0   : > { %2704 = vmatprep.subr.bf16.mxu0 %v4510_v20  ;;  %2745 = vmatprep.subr.bf16.mxu1 %v4512_v21  ;;  %v4567_v20 = vcombine.low %v1961_v7, %v1965_v8  ;;  %v4905_v7 = vld [vmem:[#allocation6 + $0xac] ss:$12 sps:$4 sm:$0xff]   ;;  %v4924_v8 = vld [vmem:[#allocation6 + $0x110] ss:$12 sps:$4 sm:$0xff]  }
 0x2d3   : > { %2705 = vmatpush1.bf16.msra.mxu0 %v4509_v27  ;;  %2746 = vmatpush1.bf16.msra.mxu1 %v4511_v28 }
 0x2d4   : > { %2706 = vmatprep.subr.bf16.mxu0 %v4518_v29  ;;  %2747 = vmatprep.subr.bf16.mxu1 %v4520_v30 }
 0x2d7   : > { %2707 = vmatpush1.bf16.msra.mxu0 %v4517_v36  ;;  %2748 = vmatpush1.bf16.msra.mxu1 %v4519_v37  ;;  %v4569_v36 = vld [vmem:[%s5713_s5 + $0x4] sm:$0xf]  ;;  %v2778_v37 = vld [vmem:[%s5713_s5] sm:$0xf] }
 0x2d8   : > { %2708 = vmatprep.subr.bf16.mxu0 %v4526_v31  ;;  %2749 = vmatprep.subr.bf16.mxu1 %v4528_v10 }
 0x2db   : > { %2709 = vmatpush1.bf16.msra.mxu0 %v4525_v16  ;;  %2750 = vmatpush1.bf16.msra.mxu1 %v4527_v38 }
 0x2dc   : > { %2710 = vmatprep.subr.bf16.mxu0 %v4534_v39  ;;  %2751 = vmatprep.subr.bf16.mxu1 %v4536_v40 }
 0x2df   : > { %2711 = vmatpush1.bf16.msra.mxu0 %v4533_v45  ;;  %2752 = vmatpush1.bf16.msra.mxu1 %v4535_v46 }
 0x2e0   : > { %2712 = vmatprep.subr.bf16.mxu0 %v4542_v47  ;;  %2753 = vmatprep.subr.bf16.mxu1 %v4544_v48  ;;  %v4574_v47 = vld [vmem:[%s5713_s5 + $0x8] sm:$0xf]  ;;  %v4577_v48 = vld [vmem:[%s5713_s5 + $0xc] sm:$0xf] }
 0x2e3   : > { %2713 = vmatpush1.bf16.msra.mxu0 %v4541_v55  ;;  %2754 = vmatpush1.bf16.msra.mxu1 %v4543_v57  ;;  %v4885_v55 = vld [vmem:[#allocation6 + $0x18] ss:$12 sps:$4 sm:$0xff]   ;;  %v4915_v57 = vld [vmem:[#allocation6 + $0x20] ss:$12 sps:$4 sm:$0xff]  }
 0x2e4   : > { %2714 = vmatprep.subr.bf16.mxu0 %v4550_v58  ;;  %2755 = vmatprep.subr.bf16.mxu1 %v4552_v59  ;;  %v4890_v58 = vld [vmem:[#allocation6 + $0x34] ss:$12 sps:$4 sm:$0xff]   ;;  %v4888_v59 = vld [vmem:[#allocation6 + $0x30] ss:$12 sps:$4 sm:$0xff]  }
 0x2e7   : > { %2715 = vmatpush1.bf16.msra.mxu0 %v4549_v1  ;;  %2756 = vmatpush1.bf16.msra.mxu1 %v4551_v2  ;;  %v4899_v1 = vld [vmem:[#allocation6 + $0x7c] ss:$12 sps:$4 sm:$0xff]   ;;  %v4897_v2 = vld [vmem:[#allocation6 + $0x78] ss:$12 sps:$4 sm:$0xff]  }
 0x2e8   : > { %2716 = vmatprep.subr.bf16.mxu0 %v4558_v3  ;;  %2757 = vmatprep.subr.bf16.mxu1 %v4560_v4  ;;  %v4902_v3 = vld [vmem:[#allocation6 + $0x94] ss:$12 sps:$4 sm:$0xff]   ;;  %v4919_v4 = vld [vmem:[#allocation6 + $0xf8] ss:$12 sps:$4 sm:$0xff]  }
 0x2eb   : > { %2717 = vmatpush1.bf16.msra.mxu0 %v4557_v9  ;;  %2758 = vmatpush1.bf16.msra.mxu1 %v4559_v13  ;;  %v4925_v9 = vld [vmem:[#allocation6 + $0x50] ss:$12 sps:$4 sm:$0xff]   ;;  %v4929_v13 = vld [vmem:[#allocation6 + $0x128] ss:$12 sps:$4 sm:$0xff]  }
 0x2ec   : > { %2718 = vmatprep.subr.bf16.mxu0 %v4566_v17  ;;  %2759 = vmatprep.subr.bf16.mxu1 %v4568_v18  ;;  %v4903_v17 = vld [vmem:[#allocation6 + $0xa8] ss:$12 sps:$4 sm:$0xff]   ;;  %v4908_v18 = vld [vmem:[#allocation6 + $0xc4] ss:$12 sps:$4 sm:$0xff]  }
 0x2ef   : > { %2719 = vmatpush1.bf16.msra.mxu0 %v4565_v19  ;;  %2760 = vmatpush1.bf16.msra.mxu1 %v4567_v20  ;;  %v4930_v19 = vld [vmem:[#allocation6 + $0x68] ss:$12 sps:$4 sm:$0xff]   ;;  %v4906_v20 = vld [vmem:[#allocation6 + $0xc0] ss:$12 sps:$4 sm:$0xff]  }
 0x2f2   : > { %2721 = vmatmul.mubr.bf16.vlgmr.msra.gmra.mrb[68].mxu0 %v5623_v23  ;;  %2762 = vmatmul.mubr.bf16.vlgmr.msra.gmra.mrb[68].mxu1 %v5623_v23 }
 0x2f3   : > { %2824 = vmatprep.mubr.bf16.mxu0 %v5200_v0  ;;  %2874 = vmatprep.mubr.bf16.mxu1 %v5200_v0 }
 0x385   : > { %v2640_v21 = vpop.f32.mrb[64].mxu0  ;;  %v2681_v22 = vpop.f32.mrb[64].mxu1 }
 0x386   : > { %v2770_v24 = vpack.c.bf16 %v2640_v21, %v2640_v21  ;;  %v2772_v25 = vpack.c.bf16 %v2681_v22, %v2681_v22  ;;  %v2642_v26 = vpop.f32.mrb[65].mxu0  ;;  %v2683_v27 = vpop.f32.mrb[65].mxu1  ;;  %v4913_v21 = vld [vmem:[#allocation6 + $0xdc] ss:$12 sps:$4 sm:$0xff]   ;;  %v4911_v22 = vld [vmem:[#allocation6 + $0xd8] ss:$12 sps:$4 sm:$0xff]  }
 0x387   : > { %v2771_v28 = vpack.c.bf16 %v2642_v26, %v2642_v26  ;;  %v2773_v29 = vpack.c.bf16 %v2683_v27, %v2683_v27  ;;  %v2644_v30 = vpop.f32.mrb[66].mxu0  ;;  %v2685_v32 = vpop.f32.mrb[66].mxu1  ;;  %v4923_v26 = vld [vmem:[#allocation6 + $0x10c] ss:$12 sps:$4 sm:$0xff]   ;;  %v4921_v27 = vld [vmem:[#allocation6 + $0x108] ss:$12 sps:$4 sm:$0xff]  }
 0x388   : > { %v2837_v33 = vsel %vm2785_vm2, %v2770_v24, 0  ;;  %v2787_v34 = vsel %vm2785_vm2, %v2772_v25, 0  ;;  %v2645_v23 = vpop.f32.mrb[67].mxu0  ;;  %v2686_v35 = vpop.f32.mrb[67].mxu1  ;;  %v4918_v24 = vld [vmem:[#allocation6 + $0xf4] ss:$12 sps:$4 sm:$0xff]  }
 0x389   : > { %4570 = vmatprep.subr.msk.bf16.mxu0 %vm2785_vm2, %v2773_v29  ;;  %4572 = vmatprep.subr.msk.bf16.mxu1 %vm2785_vm2, %v2771_v28  ;;  %v4916_v25 = vld [vmem:[#allocation6 + $0xf0] ss:$12 sps:$4 sm:$0xff]   ;;  %v4926_v29 = vld [vmem:[#allocation6 + $0x120] ss:$12 sps:$4 sm:$0xff]   ;;  %v4939_v35 = vld [vmem:[#allocation6 + $0x158] ss:$12 sps:$4 sm:$0xff]  }
 0x38a   : > { %2793 = vmatpush1.bf16.msra.mxu0 %v2787_v34  ;;  %2843 = vmatpush1.bf16.msra.mxu1 %v2837_v33  ;;  %v4928_v28 = vld [vmem:[#allocation6 + $0x124] ss:$12 sps:$4 sm:$0xff]   ;;  %v4933_v30 = vld [vmem:[#allocation6 + $0x13c] ss:$12 sps:$4 sm:$0xff]   ;;  %v4934_v32 = vld [vmem:[#allocation6 + $0x140] ss:$12 sps:$4 sm:$0xff]  }
 0x38b   : > { %v4931_v33 = vld [vmem:[#allocation6 + $0x138] ss:$12 sps:$4 sm:$0xff]   ;;  %v4935_v34 = vld [vmem:[#allocation6 + $0x80] ss:$12 sps:$4 sm:$0xff]  }
 0x38c   : > { %v4938_v23 = vld [vmem:[#allocation6 + $0x154] ss:$12 sps:$4 sm:$0xff]  }
 0x38d   : > { %4571 = vmatmul.mubr.msk.bf16.vlgmr.msra.gmra.mrb[72].mxu0 %vm2781_vm3, %v4569_v36  ;;  %4573 = vmatmul.mubr.msk.bf16.vlgmr.msra.gmra.mrb[72].mxu1 %vm2781_vm3, %v2778_v37  ;;  %v4936_v36 = vld [vmem:[#allocation6 + $0x150] ss:$12 sps:$4 sm:$0xff]   ;;  %v4940_v37 = vld [vmem:[#allocation6 + $0x98] ss:$12 sps:$4 sm:$0xff]  }
 0x38e   : > { %2926 = vmatprep.mubr.bf16.mxu0 %v5200_v0  ;;  %2980 = vmatprep.mubr.bf16.mxu1 %v5200_v0 }
 0x3c5   : > { %v2722_v31 = vpop.f32.mrb[68].mxu0  ;;  %v2763_v10 = vpop.f32.mrb[68].mxu1 }
 0x3c6   : > { %v2774_v11 = vpack.c.bf16 %v2722_v31, %v2722_v31  ;;  %v2776_v12 = vpack.c.bf16 %v2763_v10, %v2763_v10  ;;  %v2724_v14 = vpop.f32.mrb[69].mxu0  ;;  %v2765_v15 = vpop.f32.mrb[69].mxu1  ;;  %v4943_v31 = vld [vmem:[#allocation6 + $0x16c] ss:$12 sps:$4 sm:$0xff]   ;;  %v4944_v10 = vld [vmem:[#allocation6 + $0x170] ss:$12 sps:$4 sm:$0xff]  }
 0x3c7   : > { %v2775_v16 = vpack.c.bf16 %v2724_v14, %v2724_v14  ;;  %v2777_v38 = vpack.c.bf16 %v2765_v15, %v2765_v15  ;;  %v2726_v39 = vpop.f32.mrb[70].mxu0  ;;  %v2767_v40 = vpop.f32.mrb[70].mxu1 }
 0x3c8   : > { %v2889_v43 = vsel %vm2785_vm2, %v2774_v11, 0  ;;  %v2943_v44 = vsel %vm2785_vm2, %v2776_v12, 0  ;;  %v2727_v45 = vpop.f32.mrb[71].mxu0  ;;  %v2768_v46 = vpop.f32.mrb[71].mxu1  ;;  %v4941_v11 = vld [vmem:[#allocation6 + $0x168] ss:$12 sps:$4 sm:$0xff]  }
 0x3c9   : > { %4575 = vmatprep.subr.msk.bf16.mxu0 %vm2785_vm2, %v2775_v16  ;;  %4578 = vmatprep.subr.msk.bf16.mxu1 %vm2785_vm2, %v2777_v38  ;;  %v4945_v12 = vld [vmem:[#allocation6 + $0xb0] ss:$12 sps:$4 sm:$0xff]   ;;  %v2991_v45 = vld [vmem:[%s5714_s6] sm:$0x3] }
 0x3ca   : > { %2895 = vmatpush1.bf16.msra.mxu0 %v2889_v43  ;;  %2949 = vmatpush1.bf16.msra.mxu1 %v2943_v44 }
 0x3cb   : > { %3329 = vmatprep.subr.bf16.mxu0 %v4884_v41  ;;  %4701 = vmatprep.subr.bf16.mxu1 %v4909_v42 }
 0x3cd   : > { %4576 = vmatmul.mubr.msk.bf16.vlgmr.msra.gmra.mrb[76].mxu0 %vm2781_vm3, %v4574_v47  ;;  %4579 = vmatmul.mubr.msk.bf16.vlgmr.msra.gmra.mrb[76].mxu1 %vm2781_vm3, %v4577_v48 }
 0x3ce   : > { %3330 = vmatpush1.bf16.msra.mxu0 %v4882_v49  ;;  %4702 = vmatpush3.bf16.msra.mxu1 %v4910_v50  ;;  %v2996_v49 = vrot.slane %v2991_v45, %v5613_v54 }
 0x3cf   : > { %3331 = vmatprep.subr.bf16.mxu0 %v4887_v51  ;;  %4703 = vmatprep.subr.bf16.mxu1 %v4914_v52 }
 0x3d2   : > { %3332 = vmatpush1.bf16.msra.mxu0 %v4885_v55  ;;  %4704 = vmatpush3.bf16.msra.mxu1 %v4915_v57  ;;  %v3000_v55 = vrot.slane %v2991_v45, %v5619_v56  ;;  %v4978_v45 = vld [vmem:[#allocation7 + $0xa4] ss:$16 sps:$4 sm:$0xff]  }
 0x3d3   : > { %3333 = vmatprep.subr.bf16.mxu0 %v4890_v58  ;;  %4705 = vmatprep.subr.bf16.mxu1 %v4919_v4 }
 0x3d6   : > { %3334 = vmatpush1.bf16.msra.mxu0 %v4888_v59  ;;  %4706 = vmatpush3.bf16.msra.mxu1 %v4920_v5 }
 0x3d7   : > { %3335 = vmatprep.subr.bf16.mxu0 %v4893_v60  ;;  %4707 = vmatprep.subr.bf16.mxu1 %v4924_v8  ;;  %v4951_v8 = vld [vmem:[#allocation7 + $0xc] ss:$16 sps:$4 sm:$0xff]  }
 0x3da   : > { %3336 = vmatpush1.bf16.msra.mxu0 %v4891_v61  ;;  %4708 = vmatpush3.bf16.msra.mxu1 %v4925_v9  ;;  %v4957_v9 = vld [vmem:[#allocation7 + $0x2c] ss:$16 sps:$4 sm:$0xff]  }
 0x3db   : > { %3337 = vmatprep.subr.bf16.mxu0 %v4896_v62  ;;  %4709 = vmatprep.subr.bf16.mxu1 %v4929_v13  ;;  %v4955_v13 = vld [vmem:[#allocation7 + $0x28] ss:$16 sps:$4 sm:$0xff]  }
 0x3de   : > { %3338 = vmatpush1.bf16.msra.mxu0 %v4894_v63  ;;  %4710 = vmatpush3.bf16.msra.mxu1 %v4930_v19 }
 0x3df   : > { %3339 = vmatprep.subr.bf16.mxu0 %v4899_v1  ;;  %4711 = vmatprep.subr.bf16.mxu1 %v4934_v32 }
 0x3e2   : > { %3340 = vmatpush1.bf16.msra.mxu0 %v4897_v2  ;;  %4712 = vmatpush3.bf16.msra.mxu1 %v4935_v34 }
 0x3e3   : > { %3341 = vmatprep.subr.bf16.mxu0 %v4902_v3  ;;  %4713 = vmatprep.subr.bf16.mxu1 %v4939_v35  ;;  %v3413_v35 = vld [vmem:[%s5716_s8] sm:$0xf] }
 0x3e6   : > { %3342 = vmatpush1.bf16.msra.mxu0 %v4900_v6  ;;  %4714 = vmatpush3.bf16.msra.mxu1 %v4940_v37  ;;  %v5201_v6 = vmov 0.0  }
 0x3e7   : > { %3343 = vmatprep.subr.bf16.mxu0 %v4905_v7  ;;  %4715 = vmatprep.subr.bf16.mxu1 %v4944_v10  ;;  %v4949_v7 = vld [vmem:[#allocation7 + $0x8] ss:$16 sps:$4 sm:$0xff]   ;;  %v4946_v10 = vld [vmem:[#allocation7] ss:$16 sps:$4 sm:$0xff]  }
 0x3ea   : > { %3344 = vmatpush1.bf16.msra.mxu0 %v4903_v17  ;;  %4716 = vmatpush3.bf16.msra.mxu1 %v4945_v12  ;;  %v4963_v17 = vld [vmem:[#allocation7 + $0x4c] ss:$16 sps:$4 sm:$0xff]   ;;  %v4952_v12 = vld [vmem:[#allocation7 + $0x20] ss:$16 sps:$4 sm:$0xff]  }
 0x3eb   : > { %3345 = vmatprep.subr.bf16.mxu0 %v4908_v18  ;;  %4773 = vmatprep.subr.bf16.mxu1 %v5201_v6  ;;  %v4961_v18 = vld [vmem:[#allocation7 + $0x48] ss:$16 sps:$4 sm:$0xff]  }
 0x3ee   : > { %3346 = vmatpush1.bf16.msra.mxu0 %v4906_v20 }
 0x3ef   : > { %3347 = vmatprep.subr.bf16.mxu0 %v4913_v21 }
 0x3f2   : > { %3348 = vmatpush1.bf16.msra.mxu0 %v4911_v22 }
 0x3f3   : > { %3349 = vmatprep.subr.bf16.mxu0 %v4918_v24 }
 0x3f6   : > { %3350 = vmatpush1.bf16.msra.mxu0 %v4916_v25 }
 0x3f7   : > { %3351 = vmatprep.subr.bf16.mxu0 %v4923_v26 }
 0x3fa   : > { %3352 = vmatpush1.bf16.msra.mxu0 %v4921_v27 }
 0x3fb   : > { %3353 = vmatprep.subr.bf16.mxu0 %v4928_v28 }
 0x3fe   : > { %3354 = vmatpush1.bf16.msra.mxu0 %v4926_v29 }
 0x3ff   : > { %3355 = vmatprep.subr.bf16.mxu0 %v4933_v30 }
 0x402   : > { %3356 = vmatpush1.bf16.msra.mxu0 %v4931_v33  ;;  %v4628_v33 = vld [vmem:[%s5716_s8 + $0x4] sm:$0xf] }
 0x403   : > { %3357 = vmatprep.subr.bf16.mxu0 %v4938_v23 }
 0x406   : > { %3358 = vmatpush1.bf16.msra.mxu0 %v4936_v36  ;;  %v4948_v36 = vld [vmem:[#allocation7 + $0x4] ss:$16 sps:$4 sm:$0xff]  }
 0x407   : > { %3359 = vmatprep.subr.bf16.mxu0 %v4943_v31  ;;  %v4631_v31 = vld [vmem:[%s5716_s8 + $0x8] sm:$0xf] }
 0x40a   : > { %3360 = vmatpush1.bf16.msra.mxu0 %v4941_v11  ;;  %v4954_v11 = vld [vmem:[#allocation7 + $0x24] ss:$16 sps:$4 sm:$0xff]  }
 0x40b   : > { %3822 = vmatprep.subr.bf16.mxu0 %v4951_v8  ;;  %v4633_v8 = vld [vmem:[%s5717_s9] ss:$0 sm:$0xff] }
 0x460   : > { %v2826_v14 = vpop.f32.mrb[72].mxu0  ;;  %v2876_v15 = vpop.f32.mrb[72].mxu1 }
 0x461   : > { %v2828_v16 = vpop.f32.mrb[73].mxu0  ;;  %v2877_v38 = vadd.f32 %v2876_v15, %v2826_v14  ;;  %v2878_v39 = vpop.f32.mrb[73].mxu1  ;;  %v4960_v14 = vld [vmem:[#allocation7 + $0x44] ss:$16 sps:$4 sm:$0xff]   ;;  %v4958_v15 = vld [vmem:[#allocation7 + $0x40] ss:$16 sps:$4 sm:$0xff]  }
 0x462   : > { %v2830_v40 = vpop.f32.mrb[74].mxu0  ;;  %v2879_v41 = vadd.f32 %v2878_v39, %v2828_v16  ;;  %v2880_v42 = vpop.f32.mrb[74].mxu1  ;;  %v4964_v16 = vld [vmem:[#allocation7 + $0x60] ss:$16 sps:$4 sm:$0xff]   ;;  %v4967_v39 = vld [vmem:[#allocation7 + $0x68] ss:$16 sps:$4 sm:$0xff]  }
 0x463   : > { %v2831_v43 = vpop.f32.mrb[75].mxu0  ;;  %v2881_v44 = vpop.f32.mrb[75].mxu1  ;;  %v4969_v40 = vld [vmem:[#allocation7 + $0x6c] ss:$16 sps:$4 sm:$0xff]  }
 0x464   : > { %v4975_v42 = vld [vmem:[#allocation7 + $0x8c] ss:$16 sps:$4 sm:$0xff]   ;;  %v4970_v43 = vld [vmem:[#allocation7 + $0x80] ss:$16 sps:$4 sm:$0xff]   ;;  %v4973_v44 = vld [vmem:[#allocation7 + $0x88] ss:$16 sps:$4 sm:$0xff]  }
 0x4a0   : > { %v2928_v46 = vpop.f32.mrb[76].mxu0  ;;  %v2982_v47 = vpop.f32.mrb[76].mxu1 }
 0x4a1   : > { %v2935_v48 = vadd.f32 %v2928_v46, %v2877_v38  ;;  %v2930_v50 = vpop.f32.mrb[77].mxu0  ;;  %v2984_v51 = vpop.f32.mrb[77].mxu1  ;;  %v4966_v38 = vld [vmem:[#allocation7 + $0x64] ss:$16 sps:$4 sm:$0xff]   ;;  %v4979_v46 = vld [vmem:[#allocation7 + $0xa8] ss:$16 sps:$4 sm:$0xff]  }
 0x4a2   : > { %v2936_v52 = vadd.f32 %v2930_v50, %v2879_v41  ;;  %v2932_v57 = vpop.f32.mrb[78].mxu0  ;;  %v2986_v58 = vpop.f32.mrb[78].mxu1  ;;  %v4972_v41 = vld [vmem:[#allocation7 + $0x84] ss:$16 sps:$4 sm:$0xff]   ;;  %v4982_v50 = vld [vmem:[#allocation7 + $0xc0] ss:$16 sps:$4 sm:$0xff]  }
 0x4a3   : > { %v2989_v59 = vadd.f32 %v2982_v47, %v2935_v48  ;;  %v2933_v60 = vpop.f32.mrb[79].mxu0  ;;  %v2987_v61 = vpop.f32.mrb[79].mxu1  ;;  %v4981_v47 = vld [vmem:[#allocation7 + $0xac] ss:$16 sps:$4 sm:$0xff]   ;;  %v4984_v48 = vld [vmem:[#allocation7 + $0xc4] ss:$16 sps:$4 sm:$0xff]  }
 0x4a4   : > { %v2990_v62 = vadd.f32 %v2984_v51, %v2936_v52  ;;  %v4985_v51 = vld [vmem:[#allocation7 + $0xc8] ss:$16 sps:$4 sm:$0xff]   ;;  %v4990_v52 = vld [vmem:[#allocation7 + $0xe4] ss:$16 sps:$4 sm:$0xff]   ;;  %v4988_v57 = vld [vmem:[#allocation7 + $0xe0] ss:$16 sps:$4 sm:$0xff]  }
 0x4a5   : > { %v3003_v63 = vadd.f32 %v2996_v49, %v2989_v59  ;;  %v4987_v49 = vld [vmem:[#allocation7 + $0xcc] ss:$16 sps:$4 sm:$0xff]   ;;  %v4991_v58 = vld [vmem:[#allocation7 + $0xe8] ss:$16 sps:$4 sm:$0xff]   ;;  %v4994_v59 = vld [vmem:[#allocation9 + $0x40] sm:$0xff]  }
 0x4a6   : > { %v3004_v1 = vadd.f32 %v3000_v55, %v2990_v62  ;;  %v4993_v55 = vld [vmem:[#allocation7 + $0xec] ss:$16 sps:$4 sm:$0xff]   ;;  %v4995_v60 = vld [vmem:[#allocation9 + $0xc0] sm:$0xff]  }
 0x4a7   : > { %v3005_v2 = vmax.f32 %v3003_v63, 0.0 }
 0x4a8   : > { %v3006_v3 = vmax.f32 %v3004_v1, 0.0 }
 0x4a9   : > { %v3007_v5 = vpack.c.bf16 %v3005_v2, %v3005_v2 }
 0x4aa   : > { %v3008_v4 = vpack.c.bf16 %v3006_v3, %v3006_v3 }
 0x4ac   : > { %3361 = vmatprep.mubr.bf16.mxu0 %v3008_v4  ;;  %3402 = vmatprep.mubr.bf16.mxu1 %v3008_v4 }
 0x4ad   : > { %3362 = vmatmul.mubr.bf16.vlgmr.msra.gmra.mrb[80].mxu0 %v3007_v5  ;;  %3403 = vmatmul.mubr.bf16.vlgmr.msra.gmra.mrb[80].mxu1 %v3007_v5 }
 0x4ae   : > { %3854 = vmatprep.mubr.bf16.mxu0 %v5200_v0  ;;  %4775 = vmatprep.mubr.msk.bf16.mxu1 %vm5202_vm4, %v5201_v6 }
 0x4af   : > { %3823 = vmatpush1.bf16.msra.mxu0 %v4949_v7 }
 0x4b0   : > { %3824 = vmatprep.subr.bf16.mxu0 %v4957_v9 }
 0x4b3   : > { %3825 = vmatpush1.bf16.msra.mxu0 %v4955_v13 }
 0x4b4   : > { %3826 = vmatprep.subr.bf16.mxu0 %v4963_v17 }
 0x4b7   : > { %3827 = vmatpush1.bf16.msra.mxu0 %v4961_v18 }
 0x4b8   : > { %3828 = vmatprep.subr.bf16.mxu0 %v4969_v40  ;;  %v5020_v40 = vld [vmem:[#allocation9 + $0x30] sm:$0xff]  }
 0x4bb   : > { %3829 = vmatpush1.bf16.msra.mxu0 %v4967_v39  ;;  %v5019_v39 = vld [vmem:[#allocation9 + $0xf0] sm:$0xff]  }
 0x4bc   : > { %3830 = vmatprep.subr.bf16.mxu0 %v4975_v42  ;;  %v5022_v42 = vld [vmem:[#allocation9 + $0x78] sm:$0xff]  }
 0x4bf   : > { %3831 = vmatpush1.bf16.msra.mxu0 %v4973_v44  ;;  %v5024_v44 = vld [vmem:[#allocation9 + $0x38] sm:$0xff]  }
 0x4c0   : > { %3832 = vmatprep.subr.bf16.mxu0 %v4981_v47  ;;  %v3615_v47 = vsub.s32 3, %v5610_v53 }
 0x4c3   : > { %3833 = vmatpush1.bf16.msra.mxu0 %v4979_v46  ;;  %v3599_v46 = vld [vmem:[%s5719_s11] sm:$0xf] }
 0x4c4   : > { %3834 = vmatprep.subr.bf16.mxu0 %v4987_v49 }
 0x4c7   : > { %3835 = vmatpush1.bf16.msra.mxu0 %v4985_v51  ;;  %v3616_v51 = vrot.slane %v3599_v46, %v3615_v47 }
 0x4c8   : > { %3836 = vmatprep.subr.bf16.mxu0 %v4993_v55 }
 0x4cb   : > { %3837 = vmatpush1.bf16.msra.mxu0 %v4991_v58 }
 0x4cc   : > { %4751 = vmatprep.subr.bf16.mxu0 %v4995_v60 }
 0x580   : > { %v3363_v19 = vpop.f32.mrb[80].mxu0  ;;  %v4717_v20 = vpop.f32.mrb[80].mxu1 }
 0x581   : > { %v3365_v21 = vpop.f32.mrb[81].mxu0  ;;  %v4718_v22 = vpop.f32.mrb[81].mxu1  ;;  %v3410_v30 = vpack.c.bf16 %v3363_v19, %v3363_v19 }
 0x582   : > { %v3411_v24 = vpack.c.bf16 %v3365_v21, %v3365_v21  ;;  %v4719_v25 = vadd.f32 %v4718_v22, %v4717_v20  ;;  %v3367_v26 = vpop.f32.mrb[82].mxu0  ;;  %v4720_v27 = vpop.f32.mrb[82].mxu1  ;;  %v4996_v21 = vld [vmem:[#allocation9] sm:$0xff]  }
 0x583   : > { %v3368_v28 = vpop.f32.mrb[83].mxu0  ;;  %v4721_v29 = vpop.f32.mrb[83].mxu1  ;;  %v3466_v34 = vsel %vm2785_vm2, %v3410_v30, 0  ;;  %v4997_v22 = vld [vmem:[#allocation9 + $0x80] sm:$0xff]   ;;  %v4999_v26 = vld [vmem:[#allocation9 + $0xc8] sm:$0xff]   ;;  %v5003_v30 = vld [vmem:[#allocation9 + $0xd0] sm:$0xff]  }
 0x584   : > { %v3420_v32 = vsel %vm2785_vm2, %v3411_v24, 0  ;;  %v3412_v23 = vpack.c.bf16 %v4719_v25, %v4719_v25  ;;  %v4998_v25 = vld [vmem:[#allocation9 + $0x48] sm:$0xff]   ;;  %v5002_v29 = vld [vmem:[#allocation9 + $0x50] sm:$0xff]  }
 0x585   : > { %4774 = vmatpush3.bf16.msra.mxu1 %v3420_v32  ;;  %v5000_v27 = vld [vmem:[#allocation9 + $0x8] sm:$0xff]   ;;  %v5004_v32 = vld [vmem:[#allocation9 + $0x10] sm:$0xff]  }
 0x586   : > { %4779 = vmatprep.subr.bf16.mxu1 %v5201_v6  ;;  %v3514_v37 = vsel %vm2785_vm2, %v3412_v23, 0  ;;  %v5001_v28 = vld [vmem:[#allocation9 + $0x88] sm:$0xff]   ;;  %v5007_v23 = vld [vmem:[#allocation9 + $0xd8] sm:$0xff]  }
 0x588   : > { %4776 = vmatmul.mubr.msk.bf16.vlgmr.msra.gmra.mrb[84].mxu1 %vm2781_vm3, %v4628_v33  ;;  %v5005_v33 = vld [vmem:[#allocation9 + $0x90] sm:$0xff]  }
 0x589   : > { %4780 = vmatpush3.bf16.msra.mxu1 %v3466_v34  ;;  %4781 = vmatprep.mubr.msk.bf16.mxu1 %vm5202_vm4, %v5201_v6  ;;  %v5006_v34 = vld [vmem:[#allocation9 + $0x58] sm:$0xff]  }
 0x58a   : > { %4785 = vmatprep.subr.bf16.mxu1 %v5201_v6 }
 0x590   : > { %4782 = vmatmul.mubr.msk.bf16.vlgmr.msra.gmra.mrb[88].mxu1 %vm2781_vm3, %v3413_v35  ;;  %v5008_v35 = vld [vmem:[#allocation9 + $0x18] sm:$0xff]  }
 0x591   : > { %4786 = vmatpush3.bf16.msra.mxu1 %v3514_v37  ;;  %4787 = vmatprep.mubr.msk.bf16.mxu1 %vm5202_vm4, %v5201_v6  ;;  %v5010_v37 = vld [vmem:[#allocation9 + $0x60] sm:$0xff]  }
 0x592   : > { %3781 = vmatprep.subr.bf16.mxu1 %v4948_v36  ;;  %v5009_v36 = vld [vmem:[#allocation9 + $0x98] sm:$0xff]  }
 0x598   : > { %4788 = vmatmul.mubr.msk.bf16.vlgmr.msra.gmra.mrb[92].mxu1 %vm2781_vm3, %v4631_v31  ;;  %v5011_v31 = vld [vmem:[#allocation9 + $0xe0] sm:$0xff]  }
 0x599   : > { %3782 = vmatpush1.bf16.msra.mxu1 %v4946_v10  ;;  %3813 = vmatprep.mubr.bf16.mxu1 %v5200_v0  ;;  %v4976_v0 = vld [vmem:[#allocation7 + $0xa0] ss:$16 sps:$4 sm:$0xff]  }
 0x59a   : > { %3783 = vmatprep.subr.bf16.mxu1 %v4954_v11  ;;  %v5012_v10 = vld [vmem:[#allocation9 + $0x20] sm:$0xff]  }
 0x59b   : > { %v5013_v11 = vld [vmem:[#allocation9 + $0xa0] sm:$0xff]  }
 0x59d   : > { %3784 = vmatpush1.bf16.msra.mxu1 %v4952_v12  ;;  %v5014_v12 = vld [vmem:[#allocation9 + $0x68] sm:$0xff]  }
 0x59e   : > { %3785 = vmatprep.subr.bf16.mxu1 %v4960_v14  ;;  %v5015_v14 = vld [vmem:[#allocation9 + $0xe8] sm:$0xff]  }
 0x5a1   : > { %3786 = vmatpush1.bf16.msra.mxu1 %v4958_v15  ;;  %v5016_v15 = vld [vmem:[#allocation9 + $0x28] sm:$0xff]  }
 0x5a2   : > { %3787 = vmatprep.subr.bf16.mxu1 %v4966_v38  ;;  %v5018_v38 = vld [vmem:[#allocation9 + $0x70] sm:$0xff]  }
 0x5a5   : > { %3788 = vmatpush1.bf16.msra.mxu1 %v4964_v16  ;;  %v5017_v16 = vld [vmem:[#allocation9 + $0xa8] sm:$0xff]  }
 0x5a6   : > { %3789 = vmatprep.subr.bf16.mxu1 %v4972_v41  ;;  %v5021_v41 = vld [vmem:[#allocation9 + $0xb0] sm:$0xff]  }
 0x5a9   : > { %3790 = vmatpush1.bf16.msra.mxu1 %v4970_v43  ;;  %v5023_v43 = vld [vmem:[#allocation9 + $0xf8] sm:$0xff]  }
 0x5aa   : > { %3791 = vmatprep.subr.bf16.mxu1 %v4978_v45  ;;  %v3611_v45 = vsub.s32 2, %v5610_v53 }
 0x5ac   : > { %v3612_v49 = vrot.slane %v3599_v46, %v3611_v45 }
 0x5ad   : > { %3792 = vmatpush1.bf16.msra.mxu1 %v4976_v0  ;;  %v5025_v0 = vld [vmem:[#allocation9 + $0xb8] sm:$0xff]  }
 0x5ae   : > { %3793 = vmatprep.subr.bf16.mxu1 %v4984_v48  ;;  %v3604_v48 = vrot.slane %v3599_v46, %v5613_v54 }
 0x5b1   : > { %3794 = vmatpush1.bf16.msra.mxu1 %v4982_v50  ;;  %v3608_v50 = vrot.slane %v3599_v46, %v5619_v56 }
 0x5b2   : > { %3795 = vmatprep.subr.bf16.mxu1 %v4990_v52 }
 0x5b5   : > { %3796 = vmatpush1.bf16.msra.mxu1 %v4988_v57 }
 0x5b6   : > { %4729 = vmatprep.subr.bf16.mxu1 %v4994_v59 }
 0x65b   : > { %v3456_v61 = vpop.f32.mrb[84].mxu1 }
 0x65c   : > { %v4777_v62 = vpop.f32.mrb[85].mxu1 }
 0x65d   : > { %v3459_v63 = vpop.f32.mrb[86].mxu1 }
 0x65e   : > { %v4778_v1 = vpop.f32.mrb[87].mxu1 }
 0x663   : > { %v3502_v2 = vpop.f32.mrb[88].mxu1 }
 0x664   : > { %v3503_v3 = vadd.f32 %v3502_v2, %v3456_v61  ;;  %v4783_v4 = vpop.f32.mrb[89].mxu1 }
 0x665   : > { %v3505_v5 = vpop.f32.mrb[90].mxu1 }
 0x666   : > { %v4784_v6 = vpop.f32.mrb[91].mxu1 }
 0x66b   : > { %v3550_v7 = vpop.f32.mrb[92].mxu1 }
 0x66c   : > { %v3556_v9 = vadd.f32 %v3550_v7, %v3503_v3  ;;  %v4789_v13 = vpop.f32.mrb[93].mxu1 }
 0x66d   : > { %v3553_v17 = vpop.f32.mrb[94].mxu1 }
 0x66e   : > { %v3564_v18 = vadd.f32 %v4633_v8, %v3556_v9  ;;  %v4790_v19 = vpop.f32.mrb[95].mxu1  ;;  %v4666_v17 = vld [vmem:[%s5741_s15] ss:$0 sm:$0xff] }
 0x670   : > { %v3565_v20 = vmax.f32 %v3564_v18, 0.0 }
 0x672   : > { %v3566_v24 = vpack.c.bf16 %v3565_v20, %v3565_v20 }
 0x674   : > { %3814 = vmatmul.mubr.bf16.vlgmr.msra.gmra.mrb[96].mxu1 %v3566_v24  ;;  %3855 = vmatmul.mubr.bf16.vlgmr.msra.gmra.mrb[84].mxu0 %v3566_v24 }
 0x675   : > { %4730 = vmatpush3.bf16.msra.mxu1 %v4996_v21  ;;  %4752 = vmatpush3.bf16.msra.mxu0 %v4997_v22 }
 0x676   : > { %4731 = vmatprep.subr.bf16.mxu1 %v4998_v25  ;;  %4753 = vmatprep.subr.bf16.mxu0 %v4999_v26 }
 0x679   : > { %4732 = vmatpush3.bf16.msra.mxu1 %v5000_v27  ;;  %4754 = vmatpush3.bf16.msra.mxu0 %v5001_v28 }
 0x67a   : > { %4733 = vmatprep.subr.bf16.mxu1 %v5002_v29  ;;  %4755 = vmatprep.subr.bf16.mxu0 %v5003_v30 }
 0x67d   : > { %4734 = vmatpush3.bf16.msra.mxu1 %v5004_v32  ;;  %4756 = vmatpush3.bf16.msra.mxu0 %v5005_v33 }
 0x67e   : > { %4735 = vmatprep.subr.bf16.mxu1 %v5006_v34  ;;  %4757 = vmatprep.subr.bf16.mxu0 %v5007_v23 }
 0x681   : > { %4736 = vmatpush3.bf16.msra.mxu1 %v5008_v35  ;;  %4758 = vmatpush3.bf16.msra.mxu0 %v5009_v36 }
 0x682   : > { %4737 = vmatprep.subr.bf16.mxu1 %v5010_v37  ;;  %4759 = vmatprep.subr.bf16.mxu0 %v5011_v31 }
 0x685   : > { %4738 = vmatpush3.bf16.msra.mxu1 %v5012_v10  ;;  %4760 = vmatpush3.bf16.msra.mxu0 %v5013_v11 }
 0x686   : > { %4739 = vmatprep.subr.bf16.mxu1 %v5014_v12  ;;  %4761 = vmatprep.subr.bf16.mxu0 %v5015_v14 }
 0x689   : > { %4740 = vmatpush3.bf16.msra.mxu1 %v5016_v15  ;;  %4762 = vmatpush3.bf16.msra.mxu0 %v5017_v16 }
 0x68a   : > { %4741 = vmatprep.subr.bf16.mxu1 %v5018_v38  ;;  %4763 = vmatprep.subr.bf16.mxu0 %v5019_v39 }
 0x68d   : > { %4742 = vmatpush3.bf16.msra.mxu1 %v5020_v40  ;;  %4764 = vmatpush3.bf16.msra.mxu0 %v5021_v41 }
 0x68e   : > { %4743 = vmatprep.subr.bf16.mxu1 %v5022_v42  ;;  %4765 = vmatprep.subr.bf16.mxu0 %v5023_v43 }
 0x691   : > { %4744 = vmatpush3.bf16.msra.mxu1 %v5024_v44  ;;  %4766 = vmatpush3.bf16.msra.mxu0 %v5025_v0 }
 0x747   : > { %v3815_v52 = vpop.f32.mrb[96].mxu1  ;;  %v3856_v55 = vpop.f32.mrb[84].mxu0 }
 0x748   : > { %v3816_v57 = vadd.f32 %v3815_v52, %v3604_v48  ;;  %v3857_v58 = vadd.f32 %v3856_v55, %v3612_v49  ;;  %v3817_v59 = vpop.f32.mrb[97].mxu1  ;;  %v3858_v60 = vpop.f32.mrb[85].mxu0 }
 0x749   : > { %v3818_v61 = vadd.f32 %v3817_v59, %v3608_v50  ;;  %v3859_v62 = vadd.f32 %v3858_v60, %v3616_v51  ;;  %v3819_v63 = vpop.f32.mrb[98].mxu1  ;;  %v3860_v1 = vpop.f32.mrb[86].mxu0 }
 0x74a   : > { %v3863_v2 = vmax.f32 %v3816_v57, 0.0  ;;  %v3865_v3 = vmax.f32 %v3857_v58, 0.0  ;;  %v3820_v4 = vpop.f32.mrb[99].mxu1  ;;  %v3861_v53 = vpop.f32.mrb[87].mxu0 }
 0x74b   : > { %v3864_v5 = vmax.f32 %v3818_v61, 0.0  ;;  %v3866_v54 = vmax.f32 %v3859_v62, 0.0 }
 0x74c   : > { %v3867_v7 = vpack.c.bf16 %v3863_v2, %v3863_v2  ;;  %v3869_v8 = vpack.c.bf16 %v3865_v3, %v3865_v3 }
 0x74d   : > { %v3868_v6 = vpack.c.bf16 %v3864_v5, %v3864_v5  ;;  %v3870_v56 = vpack.c.bf16 %v3866_v54, %v3866_v54 }
 0x74f   : > { %4166 = vmatprep.mubr.bf16.mxu1 %v3868_v6  ;;  %4206 = vmatprep.mubr.bf16.mxu0 %v3870_v56 }
 0x750   : > { %4167 = vmatmul.mubr.bf16.vlgmr.msra.gmra.mrb[100].mxu1 %v3867_v7  ;;  %4207 = vmatmul.mubr.bf16.vlgmr.msra.gmra.mrb[88].mxu0 %v3869_v8 }
 0x823   : > { %v4745_v9 = vpop.f32.mrb[100].mxu1  ;;  %v4767_v13 = vpop.f32.mrb[88].mxu0 }
 0x824   : > { %v4746_v18 = vpop.f32.mrb[101].mxu1  ;;  %v4768_v19 = vpop.f32.mrb[89].mxu0 }
 0x825   : > { %v4747_v20 = vadd.f32 %v4746_v18, %v4745_v9  ;;  %v4769_v21 = vadd.f32 %v4768_v19, %v4767_v13  ;;  %v4748_v22 = vpop.f32.mrb[102].mxu1  ;;  %v4770_v24 = vpop.f32.mrb[90].mxu0 }
 0x826   : > { %v4749_v25 = vpop.f32.mrb[103].mxu1  ;;  %v4771_v26 = vpop.f32.mrb[91].mxu0 }
 0x827   : > { %v4169_v27 = vadd.f32 %v4747_v20, %v4666_v17 }
 0x829   : > { %v4209_v28 = vadd.f32 %v4769_v21, %v4169_v27 }
 0x82b   : > { %4214 = vst [vmem:[%s538_s14] sm:$0xff] %v4209_v28 }
 0x82c PF: > { %s5743_s29 = sld [smem:[#allocation13_spill]] }
 0x832   : > { %s27_s29 = sadd.s32 1, %s5743_s29  }
 0x833   : > { %p24_p1 = scmp.ge.s32.totalorder %s27_s29, 4  }
 0x835   :  { %26 = sbr.rel (!%p24_p1) target bundleno = 6 (0x6), region = 139 }
 0x83c   :  { %4234 = vsyncpa [#allocation3], 1 }
 0x83d   :  { %4236 = vsyncpa [#allocation3 + $0x1], 1 }
 0x83e   :  { %4237 = vsyncpa [#allocation5], 1 }
 0x83f   :  { %4238 = vsyncpa [#allocation8], 1 }

</bundles_post_ra>
